<compile_context>
chip_gen: v6e
topology: v6e:2x2x1
jax: 0.10.0
libtpu: 0.0.40
codegen_flags: <defaults>
</compile_context>

<pallas_src>
import functools

import jax
import jax.numpy as jnp
from jax import lax
from jax.experimental import pallas as pl
from jax.experimental.pallas import tpu as pltpu


# ---------------------------------------------------------------------------
# Fused kernel: one grid cell per batch element.
#   x_ref    : (N, C)    input tokens for batch b
#   wqkv_ref : (C, 3C)   fused q/k/v projection weights (q columns pre-scaled)
#   wproj_ref: (C, C)    output projection weights
#   b_ref    : (1, C)    output projection bias
#   o_ref    : (N, C)    output tokens for batch b (written once)
# ---------------------------------------------------------------------------
def _fused_attn_kernel(x_ref, wqkv_ref, wproj_ref, b_ref, o_ref, *, num_heads):
    N, C = x_ref.shape
    D = C // num_heads

    x = x_ref[...].astype(jnp.float32)                                    # (N, C)

    # Single fused qkv projection (softmax scale already folded into W_q).
    qkv = jnp.dot(x, wqkv_ref[...],
                  preferred_element_type=jnp.float32,
                  precision=lax.Precision.HIGHEST)                        # (N, 3C)

    head_outs = []
    for h in range(num_heads):   # static, fully unrolled (H known at trace time)
        q_h = qkv[:, h * D:(h + 1) * D]                                   # (N, D)
        k_h = qkv[:, C + h * D:C + (h + 1) * D]                           # (N, D)
        v_h = qkv[:, 2 * C + h * D:2 * C + (h + 1) * D]                   # (N, D)

        # q @ k^T without materializing a transpose: contract the last dims.
        s = lax.dot_general(q_h, k_h, (((1,), (1,)), ((), ())),
                            preferred_element_type=jnp.float32,
                            precision=lax.Precision.HIGHEST)              # (N, N)

        # Numerically stable, exact softmax (no approx reciprocal: the EUP is
        # nowhere near the binding unit at these sizes).
        s = s - jnp.max(s, axis=-1, keepdims=True)
        p = jnp.exp(s)
        p = p / jnp.sum(p, axis=-1, keepdims=True)

        head_outs.append(
            jnp.dot(p, v_h,
                    preferred_element_type=jnp.float32,
                    precision=lax.Precision.HIGHEST))                     # (N, D)

    # Concatenate heads -> (N, C); single output projection + bias; single store.
    attn_out = jnp.concatenate(head_outs, axis=-1)                        # (N, C)
    out = jnp.dot(attn_out, wproj_ref[...],
                  preferred_element_type=jnp.float32,
                  precision=lax.Precision.HIGHEST) + b_ref[...]           # (N, C)
    o_ref[...] = out.astype(o_ref.dtype)


# ---------------------------------------------------------------------------
# One-time parameter preparation (hoisted out of the forward): fold the softmax
# scale into the q columns of w_qkv, reshape the bias.  Call once at load time.
# ---------------------------------------------------------------------------
def prepare_attention_params(params, num_heads):
    C = params["w_proj"].shape[0]
    D = C // num_heads
    scale = float(D) ** (-0.5)
    w_qkv = params["w_qkv"].at[:, :C].multiply(scale)   # fold scale into W_q
    return {
        "w_qkv": w_qkv,                                 # (C, 3C)
        "w_proj": params["w_proj"],                     # (C, C)
        "b_proj": params["b_proj"].reshape(1, C),       # (1, C)
    }


# ---------------------------------------------------------------------------
# Forward: one fused pallas_call, grid=(B,), no per-call weight re-layout.
# ---------------------------------------------------------------------------
def my_attention_forward(x, prepped, num_heads):
    """Pallas equivalent of myAttention.forward (drop_percentage=0.0)."""
    B, N, C = x.shape
    H = num_heads
    w_qkv, w_proj, bias = prepped["w_qkv"], prepped["w_proj"], prepped["b_proj"]

    flops = B * (2 * N * C * (3 * C)      # fused qkv projection
                 + 4 * N * N * C          # q@k^T and attn@v over all heads
                 + 2 * N * C * C)         # output projection
    bytes_accessed = 4 * (x.size + B * (w_qkv.size + w_proj.size + bias.size)
                          + B * N * C)

    kernel = functools.partial(_fused_attn_kernel, num_heads=H)

    return pl.pallas_call(
        kernel,
        out_shape=jax.ShapeDtypeStruct((B, N, C), x.dtype),
        grid=(B,),
        in_specs=[
            pl.BlockSpec((None, N, C), lambda b: (b, 0, 0)),     # x (batch b)
            pl.BlockSpec((C, 3 * C), lambda b: (0, 0)),          # fused qkv weights
            pl.BlockSpec((C, C), lambda b: (0, 0)),              # proj weights
            pl.BlockSpec((1, C), lambda b: (0, 0)),              # proj bias
        ],
        out_specs=pl.BlockSpec((None, N, C), lambda b: (b, 0, 0)),
        compiler_params=pltpu.CompilerParams(
            dimension_semantics=("parallel",),                   # B=2 -> one batch per TC on v7x
        ),
        cost_estimate=pl.CostEstimate(
            flops=flops,
            transcendentals=B * H * N * N,
            bytes_accessed=bytes_accessed,
        ),
    )(x, w_qkv, w_proj, bias)


# ---------------------------------------------------------------------------
# Pure-JAX reference for correctness check
# ---------------------------------------------------------------------------
def reference_forward(x, params, num_heads):
    B, N, C = x.shape
    D = C // num_heads
    scale = D ** (-0.5)
    qkv = x.reshape(B * N, C) @ params["w_qkv"]
    qkv = qkv.reshape(B, N, 3, num_heads, D).transpose(2, 0, 3, 1, 4)
    q, k, v = qkv[0], qkv[1], qkv[2]
    attn = jnp.einsum("bhqd,bhkd->bhqk", q, k) * scale
    attn = jax.nn.softmax(attn, axis=-1)
    out = jnp.einsum("bhqk,bhkd->bhqd", attn, v)
    out = out.transpose(0, 2, 1, 3).reshape(B * N, C)
    out = out @ params["w_proj"] + params["b_proj"]
    return out.reshape(B, N, C)


# ---------------------------------------------------------------------------
# Main
# ---------------------------------------------------------------------------
if __name__ == "__main__":
    B, N, C, H = 2, 8, 32, 8   # batch, seq, dim, num_heads -> head_dim = 4

    key = jax.random.PRNGKey(0)
    kx, kq, kp, kb = jax.random.split(key, 4)

    x = jax.random.normal(kx, (B, N, C), dtype=jnp.float32)

    # Deterministic parameter init (weights stored pre-transposed: (in, out)).
    params = {
        "w_qkv": jax.random.normal(kq, (C, 3 * C), dtype=jnp.float32) * 0.05,
        "w_proj": jax.random.normal(kp, (C, C), dtype=jnp.float32) * 0.05,
        "b_proj": jax.random.normal(kb, (C,), dtype=jnp.float32) * 0.01,
    }

    # One-time prep (scale fold + bias reshape) -- done at "load time", not per call.
    prepped = prepare_attention_params(params, num_heads=H)

    out = my_attention_forward(x, prepped, num_heads=H)
    out = jax.block_until_ready(out)

    # Reference at highest matmul precision so both sides are f32-accurate.
    with jax.default_matmul_precision("highest"):
        ref = reference_forward(x, params, num_heads=H)
    ref = jax.block_until_ready(ref)

    assert out.shape == (B, N, C)
    # Exact softmax + HIGHEST-precision f32 matmuls: tight tolerance restored.
    assert jnp.allclose(out, ref, atol=1e-5, rtol=1e-5), "mismatch vs reference"

    print("KERNEL_OK")
</pallas_src>

<mosaic_0001>
module attributes {stable_mosaic.version = 11 : i64} {
  func.func @_fused_attn_kernel(%arg0: i32, %arg1: memref<1x8x32xf32, #tpu.memory_space<vmem>>, %arg2: memref<32x96xf32, #tpu.memory_space<vmem>>, %arg3: memref<32x32xf32, #tpu.memory_space<vmem>>, %arg4: memref<1x32xf32, #tpu.memory_space<vmem>>, %arg5: memref<1x8x32xf32, #tpu.memory_space<vmem>>) attributes {dimension_semantics = [#tpu.dimension_semantics<parallel>], iteration_bounds = array<i64: 2>, scalar_prefetch = 0 : i64, scratch_operands = 0 : i64, tpu.core_type = #tpu.core_type<tc>, window_params = [{transform_indices = @transform_0, window_bounds = array<i64: 1, 8, 32>}, {pipeline_mode = #tpu.pipeline_mode<synchronous>, transform_indices = @transform_1, window_bounds = array<i64: 32, 96>}, {pipeline_mode = #tpu.pipeline_mode<synchronous>, transform_indices = @transform_2, window_bounds = array<i64: 32, 32>}, {pipeline_mode = #tpu.pipeline_mode<synchronous>, transform_indices = @transform_3, window_bounds = array<i64: 1, 32>}, {transform_indices = @transform_4, window_bounds = array<i64: 1, 8, 32>}]} {
    %c0 = arith.constant 0 : index
    %c0_0 = arith.constant 0 : index
    %c0_1 = arith.constant 0 : index
    %0 = vector.load %arg1[%c0, %c0_0, %c0_1] : memref<1x8x32xf32, #tpu.memory_space<vmem>>, vector<1x8x32xf32>
    %1 = vector.shape_cast %0 : vector<1x8x32xf32> to vector<8x32xf32>
    %c0_2 = arith.constant 0 : index
    %c0_3 = arith.constant 0 : index
    %2 = vector.load %arg2[%c0_2, %c0_3] : memref<32x96xf32, #tpu.memory_space<vmem>>, vector<32x96xf32>
    %cst = arith.constant dense<0.000000e+00> : vector<8x96xf32>
    %3 = tpu.matmul %1, %2, %cst {dimension_numbers = #tpu.dot_dimension_numbers<[1], [0], [0], [1], [0, 0, 1, 1], [], []>, precision = #tpu.contract_precision<fp32>} : vector<8x32xf32>, vector<32x96xf32>, vector<8x96xf32> -> vector<8x96xf32>
    %4 = vector.extract_strided_slice %3 {offsets = [0, 0], sizes = [8, 4], strides = [1, 1]} : vector<8x96xf32> to vector<8x4xf32>
    %5 = vector.extract_strided_slice %3 {offsets = [0, 32], sizes = [8, 4], strides = [1, 1]} : vector<8x96xf32> to vector<8x4xf32>
    %6 = vector.extract_strided_slice %3 {offsets = [0, 64], sizes = [8, 4], strides = [1, 1]} : vector<8x96xf32> to vector<8x4xf32>
    %cst_4 = arith.constant dense<0.000000e+00> : vector<8x8xf32>
    %7 = tpu.matmul %4, %5, %cst_4 {dimension_numbers = #tpu.dot_dimension_numbers<[1], [1], [0], [0], [0, 0, 1, 0], [], []>, precision = #tpu.contract_precision<fp32>} : vector<8x4xf32>, vector<8x4xf32>, vector<8x8xf32> -> vector<8x8xf32>
    %cst_5 = arith.constant dense<0xFF800000> : vector<8xf32>
    %8 = vector.multi_reduction <maximumf>, %7, %cst_5 [1] : vector<8x8xf32> to vector<8xf32>
    %9 = vector.shape_cast %8 : vector<8xf32> to vector<8x1xf32>
    %10 = vector.broadcast %9 : vector<8x1xf32> to vector<8x8xf32>
    %11 = arith.subf %7, %10 : vector<8x8xf32>
    %12 = math.exp %11 : vector<8x8xf32>
    %cst_6 = arith.constant dense<0.000000e+00> : vector<8xf32>
    %13 = vector.multi_reduction <add>, %12, %cst_6 [1] : vector<8x8xf32> to vector<8xf32>
    %14 = vector.shape_cast %13 : vector<8xf32> to vector<8x1xf32>
    %15 = vector.broadcast %14 : vector<8x1xf32> to vector<8x8xf32>
    %16 = arith.divf %12, %15 : vector<8x8xf32>
    %cst_7 = arith.constant dense<0.000000e+00> : vector<8x4xf32>
    %17 = tpu.matmul %16, %6, %cst_7 {dimension_numbers = #tpu.dot_dimension_numbers<[1], [0], [0], [1], [0, 0, 1, 1], [], []>, precision = #tpu.contract_precision<fp32>} : vector<8x8xf32>, vector<8x4xf32>, vector<8x4xf32> -> vector<8x4xf32>
    %18 = vector.extract_strided_slice %3 {offsets = [0, 4], sizes = [8, 4], strides = [1, 1]} : vector<8x96xf32> to vector<8x4xf32>
    %19 = vector.extract_strided_slice %3 {offsets = [0, 36], sizes = [8, 4], strides = [1, 1]} : vector<8x96xf32> to vector<8x4xf32>
    %20 = vector.extract_strided_slice %3 {offsets = [0, 68], sizes = [8, 4], strides = [1, 1]} : vector<8x96xf32> to vector<8x4xf32>
    %cst_8 = arith.constant dense<0.000000e+00> : vector<8x8xf32>
    %21 = tpu.matmul %18, %19, %cst_8 {dimension_numbers = #tpu.dot_dimension_numbers<[1], [1], [0], [0], [0, 0, 1, 0], [], []>, precision = #tpu.contract_precision<fp32>} : vector<8x4xf32>, vector<8x4xf32>, vector<8x8xf32> -> vector<8x8xf32>
    %cst_9 = arith.constant dense<0xFF800000> : vector<8xf32>
    %22 = vector.multi_reduction <maximumf>, %21, %cst_9 [1] : vector<8x8xf32> to vector<8xf32>
    %23 = vector.shape_cast %22 : vector<8xf32> to vector<8x1xf32>
    %24 = vector.broadcast %23 : vector<8x1xf32> to vector<8x8xf32>
    %25 = arith.subf %21, %24 : vector<8x8xf32>
    %26 = math.exp %25 : vector<8x8xf32>
    %cst_10 = arith.constant dense<0.000000e+00> : vector<8xf32>
    %27 = vector.multi_reduction <add>, %26, %cst_10 [1] : vector<8x8xf32> to vector<8xf32>
    %28 = vector.shape_cast %27 : vector<8xf32> to vector<8x1xf32>
    %29 = vector.broadcast %28 : vector<8x1xf32> to vector<8x8xf32>
    %30 = arith.divf %26, %29 : vector<8x8xf32>
    %cst_11 = arith.constant dense<0.000000e+00> : vector<8x4xf32>
    %31 = tpu.matmul %30, %20, %cst_11 {dimension_numbers = #tpu.dot_dimension_numbers<[1], [0], [0], [1], [0, 0, 1, 1], [], []>, precision = #tpu.contract_precision<fp32>} : vector<8x8xf32>, vector<8x4xf32>, vector<8x4xf32> -> vector<8x4xf32>
    %32 = vector.extract_strided_slice %3 {offsets = [0, 8], sizes = [8, 4], strides = [1, 1]} : vector<8x96xf32> to vector<8x4xf32>
    %33 = vector.extract_strided_slice %3 {offsets = [0, 40], sizes = [8, 4], strides = [1, 1]} : vector<8x96xf32> to vector<8x4xf32>
    %34 = vector.extract_strided_slice %3 {offsets = [0, 72], sizes = [8, 4], strides = [1, 1]} : vector<8x96xf32> to vector<8x4xf32>
    %cst_12 = arith.constant dense<0.000000e+00> : vector<8x8xf32>
    %35 = tpu.matmul %32, %33, %cst_12 {dimension_numbers = #tpu.dot_dimension_numbers<[1], [1], [0], [0], [0, 0, 1, 0], [], []>, precision = #tpu.contract_precision<fp32>} : vector<8x4xf32>, vector<8x4xf32>, vector<8x8xf32> -> vector<8x8xf32>
    %cst_13 = arith.constant dense<0xFF800000> : vector<8xf32>
    %36 = vector.multi_reduction <maximumf>, %35, %cst_13 [1] : vector<8x8xf32> to vector<8xf32>
    %37 = vector.shape_cast %36 : vector<8xf32> to vector<8x1xf32>
    %38 = vector.broadcast %37 : vector<8x1xf32> to vector<8x8xf32>
    %39 = arith.subf %35, %38 : vector<8x8xf32>
    %40 = math.exp %39 : vector<8x8xf32>
    %cst_14 = arith.constant dense<0.000000e+00> : vector<8xf32>
    %41 = vector.multi_reduction <add>, %40, %cst_14 [1] : vector<8x8xf32> to vector<8xf32>
    %42 = vector.shape_cast %41 : vector<8xf32> to vector<8x1xf32>
    %43 = vector.broadcast %42 : vector<8x1xf32> to vector<8x8xf32>
    %44 = arith.divf %40, %43 : vector<8x8xf32>
    %cst_15 = arith.constant dense<0.000000e+00> : vector<8x4xf32>
    %45 = tpu.matmul %44, %34, %cst_15 {dimension_numbers = #tpu.dot_dimension_numbers<[1], [0], [0], [1], [0, 0, 1, 1], [], []>, precision = #tpu.contract_precision<fp32>} : vector<8x8xf32>, vector<8x4xf32>, vector<8x4xf32> -> vector<8x4xf32>
    %46 = vector.extract_strided_slice %3 {offsets = [0, 12], sizes = [8, 4], strides = [1, 1]} : vector<8x96xf32> to vector<8x4xf32>
    %47 = vector.extract_strided_slice %3 {offsets = [0, 44], sizes = [8, 4], strides = [1, 1]} : vector<8x96xf32> to vector<8x4xf32>
    %48 = vector.extract_strided_slice %3 {offsets = [0, 76], sizes = [8, 4], strides = [1, 1]} : vector<8x96xf32> to vector<8x4xf32>
    %cst_16 = arith.constant dense<0.000000e+00> : vector<8x8xf32>
    %49 = tpu.matmul %46, %47, %cst_16 {dimension_numbers = #tpu.dot_dimension_numbers<[1], [1], [0], [0], [0, 0, 1, 0], [], []>, precision = #tpu.contract_precision<fp32>} : vector<8x4xf32>, vector<8x4xf32>, vector<8x8xf32> -> vector<8x8xf32>
    %cst_17 = arith.constant dense<0xFF800000> : vector<8xf32>
    %50 = vector.multi_reduction <maximumf>, %49, %cst_17 [1] : vector<8x8xf32> to vector<8xf32>
    %51 = vector.shape_cast %50 : vector<8xf32> to vector<8x1xf32>
    %52 = vector.broadcast %51 : vector<8x1xf32> to vector<8x8xf32>
    %53 = arith.subf %49, %52 : vector<8x8xf32>
    %54 = math.exp %53 : vector<8x8xf32>
    %cst_18 = arith.constant dense<0.000000e+00> : vector<8xf32>
    %55 = vector.multi_reduction <add>, %54, %cst_18 [1] : vector<8x8xf32> to vector<8xf32>
    %56 = vector.shape_cast %55 : vector<8xf32> to vector<8x1xf32>
    %57 = vector.broadcast %56 : vector<8x1xf32> to vector<8x8xf32>
    %58 = arith.divf %54, %57 : vector<8x8xf32>
    %cst_19 = arith.constant dense<0.000000e+00> : vector<8x4xf32>
    %59 = tpu.matmul %58, %48, %cst_19 {dimension_numbers = #tpu.dot_dimension_numbers<[1], [0], [0], [1], [0, 0, 1, 1], [], []>, precision = #tpu.contract_precision<fp32>} : vector<8x8xf32>, vector<8x4xf32>, vector<8x4xf32> -> vector<8x4xf32>
    %60 = vector.extract_strided_slice %3 {offsets = [0, 16], sizes = [8, 4], strides = [1, 1]} : vector<8x96xf32> to vector<8x4xf32>
    %61 = vector.extract_strided_slice %3 {offsets = [0, 48], sizes = [8, 4], strides = [1, 1]} : vector<8x96xf32> to vector<8x4xf32>
    %62 = vector.extract_strided_slice %3 {offsets = [0, 80], sizes = [8, 4], strides = [1, 1]} : vector<8x96xf32> to vector<8x4xf32>
    %cst_20 = arith.constant dense<0.000000e+00> : vector<8x8xf32>
    %63 = tpu.matmul %60, %61, %cst_20 {dimension_numbers = #tpu.dot_dimension_numbers<[1], [1], [0], [0], [0, 0, 1, 0], [], []>, precision = #tpu.contract_precision<fp32>} : vector<8x4xf32>, vector<8x4xf32>, vector<8x8xf32> -> vector<8x8xf32>
    %cst_21 = arith.constant dense<0xFF800000> : vector<8xf32>
    %64 = vector.multi_reduction <maximumf>, %63, %cst_21 [1] : vector<8x8xf32> to vector<8xf32>
    %65 = vector.shape_cast %64 : vector<8xf32> to vector<8x1xf32>
    %66 = vector.broadcast %65 : vector<8x1xf32> to vector<8x8xf32>
    %67 = arith.subf %63, %66 : vector<8x8xf32>
    %68 = math.exp %67 : vector<8x8xf32>
    %cst_22 = arith.constant dense<0.000000e+00> : vector<8xf32>
    %69 = vector.multi_reduction <add>, %68, %cst_22 [1] : vector<8x8xf32> to vector<8xf32>
    %70 = vector.shape_cast %69 : vector<8xf32> to vector<8x1xf32>
    %71 = vector.broadcast %70 : vector<8x1xf32> to vector<8x8xf32>
    %72 = arith.divf %68, %71 : vector<8x8xf32>
    %cst_23 = arith.constant dense<0.000000e+00> : vector<8x4xf32>
    %73 = tpu.matmul %72, %62, %cst_23 {dimension_numbers = #tpu.dot_dimension_numbers<[1], [0], [0], [1], [0, 0, 1, 1], [], []>, precision = #tpu.contract_precision<fp32>} : vector<8x8xf32>, vector<8x4xf32>, vector<8x4xf32> -> vector<8x4xf32>
    %74 = vector.extract_strided_slice %3 {offsets = [0, 20], sizes = [8, 4], strides = [1, 1]} : vector<8x96xf32> to vector<8x4xf32>
    %75 = vector.extract_strided_slice %3 {offsets = [0, 52], sizes = [8, 4], strides = [1, 1]} : vector<8x96xf32> to vector<8x4xf32>
    %76 = vector.extract_strided_slice %3 {offsets = [0, 84], sizes = [8, 4], strides = [1, 1]} : vector<8x96xf32> to vector<8x4xf32>
    %cst_24 = arith.constant dense<0.000000e+00> : vector<8x8xf32>
    %77 = tpu.matmul %74, %75, %cst_24 {dimension_numbers = #tpu.dot_dimension_numbers<[1], [1], [0], [0], [0, 0, 1, 0], [], []>, precision = #tpu.contract_precision<fp32>} : vector<8x4xf32>, vector<8x4xf32>, vector<8x8xf32> -> vector<8x8xf32>
    %cst_25 = arith.constant dense<0xFF800000> : vector<8xf32>
    %78 = vector.multi_reduction <maximumf>, %77, %cst_25 [1] : vector<8x8xf32> to vector<8xf32>
    %79 = vector.shape_cast %78 : vector<8xf32> to vector<8x1xf32>
    %80 = vector.broadcast %79 : vector<8x1xf32> to vector<8x8xf32>
    %81 = arith.subf %77, %80 : vector<8x8xf32>
    %82 = math.exp %81 : vector<8x8xf32>
    %cst_26 = arith.constant dense<0.000000e+00> : vector<8xf32>
    %83 = vector.multi_reduction <add>, %82, %cst_26 [1] : vector<8x8xf32> to vector<8xf32>
    %84 = vector.shape_cast %83 : vector<8xf32> to vector<8x1xf32>
    %85 = vector.broadcast %84 : vector<8x1xf32> to vector<8x8xf32>
    %86 = arith.divf %82, %85 : vector<8x8xf32>
    %cst_27 = arith.constant dense<0.000000e+00> : vector<8x4xf32>
    %87 = tpu.matmul %86, %76, %cst_27 {dimension_numbers = #tpu.dot_dimension_numbers<[1], [0], [0], [1], [0, 0, 1, 1], [], []>, precision = #tpu.contract_precision<fp32>} : vector<8x8xf32>, vector<8x4xf32>, vector<8x4xf32> -> vector<8x4xf32>
    %88 = vector.extract_strided_slice %3 {offsets = [0, 24], sizes = [8, 4], strides = [1, 1]} : vector<8x96xf32> to vector<8x4xf32>
    %89 = vector.extract_strided_slice %3 {offsets = [0, 56], sizes = [8, 4], strides = [1, 1]} : vector<8x96xf32> to vector<8x4xf32>
    %90 = vector.extract_strided_slice %3 {offsets = [0, 88], sizes = [8, 4], strides = [1, 1]} : vector<8x96xf32> to vector<8x4xf32>
    %cst_28 = arith.constant dense<0.000000e+00> : vector<8x8xf32>
    %91 = tpu.matmul %88, %89, %cst_28 {dimension_numbers = #tpu.dot_dimension_numbers<[1], [1], [0], [0], [0, 0, 1, 0], [], []>, precision = #tpu.contract_precision<fp32>} : vector<8x4xf32>, vector<8x4xf32>, vector<8x8xf32> -> vector<8x8xf32>
    %cst_29 = arith.constant dense<0xFF800000> : vector<8xf32>
    %92 = vector.multi_reduction <maximumf>, %91, %cst_29 [1] : vector<8x8xf32> to vector<8xf32>
    %93 = vector.shape_cast %92 : vector<8xf32> to vector<8x1xf32>
    %94 = vector.broadcast %93 : vector<8x1xf32> to vector<8x8xf32>
    %95 = arith.subf %91, %94 : vector<8x8xf32>
    %96 = math.exp %95 : vector<8x8xf32>
    %cst_30 = arith.constant dense<0.000000e+00> : vector<8xf32>
    %97 = vector.multi_reduction <add>, %96, %cst_30 [1] : vector<8x8xf32> to vector<8xf32>
    %98 = vector.shape_cast %97 : vector<8xf32> to vector<8x1xf32>
    %99 = vector.broadcast %98 : vector<8x1xf32> to vector<8x8xf32>
    %100 = arith.divf %96, %99 : vector<8x8xf32>
    %cst_31 = arith.constant dense<0.000000e+00> : vector<8x4xf32>
    %101 = tpu.matmul %100, %90, %cst_31 {dimension_numbers = #tpu.dot_dimension_numbers<[1], [0], [0], [1], [0, 0, 1, 1], [], []>, precision = #tpu.contract_precision<fp32>} : vector<8x8xf32>, vector<8x4xf32>, vector<8x4xf32> -> vector<8x4xf32>
    %102 = vector.extract_strided_slice %3 {offsets = [0, 28], sizes = [8, 4], strides = [1, 1]} : vector<8x96xf32> to vector<8x4xf32>
    %103 = vector.extract_strided_slice %3 {offsets = [0, 60], sizes = [8, 4], strides = [1, 1]} : vector<8x96xf32> to vector<8x4xf32>
    %104 = vector.extract_strided_slice %3 {offsets = [0, 92], sizes = [8, 4], strides = [1, 1]} : vector<8x96xf32> to vector<8x4xf32>
    %cst_32 = arith.constant dense<0.000000e+00> : vector<8x8xf32>
    %105 = tpu.matmul %102, %103, %cst_32 {dimension_numbers = #tpu.dot_dimension_numbers<[1], [1], [0], [0], [0, 0, 1, 0], [], []>, precision = #tpu.contract_precision<fp32>} : vector<8x4xf32>, vector<8x4xf32>, vector<8x8xf32> -> vector<8x8xf32>
    %cst_33 = arith.constant dense<0xFF800000> : vector<8xf32>
    %106 = vector.multi_reduction <maximumf>, %105, %cst_33 [1] : vector<8x8xf32> to vector<8xf32>
    %107 = vector.shape_cast %106 : vector<8xf32> to vector<8x1xf32>
    %108 = vector.broadcast %107 : vector<8x1xf32> to vector<8x8xf32>
    %109 = arith.subf %105, %108 : vector<8x8xf32>
    %110 = math.exp %109 : vector<8x8xf32>
    %cst_34 = arith.constant dense<0.000000e+00> : vector<8xf32>
    %111 = vector.multi_reduction <add>, %110, %cst_34 [1] : vector<8x8xf32> to vector<8xf32>
    %112 = vector.shape_cast %111 : vector<8xf32> to vector<8x1xf32>
    %113 = vector.broadcast %112 : vector<8x1xf32> to vector<8x8xf32>
    %114 = arith.divf %110, %113 : vector<8x8xf32>
    %cst_35 = arith.constant dense<0.000000e+00> : vector<8x4xf32>
    %115 = tpu.matmul %114, %104, %cst_35 {dimension_numbers = #tpu.dot_dimension_numbers<[1], [0], [0], [1], [0, 0, 1, 1], [], []>, precision = #tpu.contract_precision<fp32>} : vector<8x8xf32>, vector<8x4xf32>, vector<8x4xf32> -> vector<8x4xf32>
    %116 = tpu.concatenate %17, %31, %45, %59, %73, %87, %101, %115 in 1 : vector<8x4xf32>, vector<8x4xf32>, vector<8x4xf32>, vector<8x4xf32>, vector<8x4xf32>, vector<8x4xf32>, vector<8x4xf32>, vector<8x4xf32> -> vector<8x32xf32>
    %c0_36 = arith.constant 0 : index
    %c0_37 = arith.constant 0 : index
    %117 = vector.load %arg3[%c0_36, %c0_37] : memref<32x32xf32, #tpu.memory_space<vmem>>, vector<32x32xf32>
    %cst_38 = arith.constant dense<0.000000e+00> : vector<8x32xf32>
    %118 = tpu.matmul %116, %117, %cst_38 {dimension_numbers = #tpu.dot_dimension_numbers<[1], [0], [0], [1], [0, 0, 1, 1], [], []>, precision = #tpu.contract_precision<fp32>} : vector<8x32xf32>, vector<32x32xf32>, vector<8x32xf32> -> vector<8x32xf32>
    %c0_39 = arith.constant 0 : index
    %c0_40 = arith.constant 0 : index
    %119 = vector.load %arg4[%c0_39, %c0_40] : memref<1x32xf32, #tpu.memory_space<vmem>>, vector<1x32xf32>
    %120 = vector.broadcast %119 : vector<1x32xf32> to vector<8x32xf32>
    %121 = arith.addf %118, %120 : vector<8x32xf32>
    %c0_41 = arith.constant 0 : index
    %c0_42 = arith.constant 0 : index
    %c0_43 = arith.constant 0 : index
    %122 = vector.load %arg5[%c0_41, %c0_42, %c0_43] : memref<1x8x32xf32, #tpu.memory_space<vmem>>, vector<1x8x32xf32>
    %123 = vector.shape_cast %122 : vector<1x8x32xf32> to vector<8x32xf32>
    %124 = vector.shape_cast %121 : vector<8x32xf32> to vector<1x8x32xf32>
    tpu.vector_store %arg5[%c0_41, %c0_42, %c0_43], %124 {strides = array<i32>} : memref<1x8x32xf32, #tpu.memory_space<vmem>>, vector<1x8x32xf32>,
    return
  }
  func.func @transform_0(%arg0: i32) -> (i32, i32, i32) {
    %c0_i32 = arith.constant 0 : i32
    %c0_i32_0 = arith.constant 0 : i32
    %c0_i32_1 = arith.constant 0 : i32
    return %arg0, %c0_i32, %c0_i32_0 : i32, i32, i32
  }
  func.func @transform_1(%arg0: i32) -> (i32, i32) {
    %c0_i32 = arith.constant 0 : i32
    %c0_i32_0 = arith.constant 0 : i32
    %c0_i32_1 = arith.constant 0 : i32
    return %c0_i32, %c0_i32_0 : i32, i32
  }
  func.func @transform_2(%arg0: i32) -> (i32, i32) {
    %c0_i32 = arith.constant 0 : i32
    %c0_i32_0 = arith.constant 0 : i32
    %c0_i32_1 = arith.constant 0 : i32
    return %c0_i32, %c0_i32_0 : i32, i32
  }
  func.func @transform_3(%arg0: i32) -> (i32, i32) {
    %c0_i32 = arith.constant 0 : i32
    %c0_i32_0 = arith.constant 0 : i32
    %c0_i32_1 = arith.constant 0 : i32
    return %c0_i32, %c0_i32_0 : i32, i32
  }
  func.func @transform_4(%arg0: i32) -> (i32, i32, i32) {
    %c0_i32 = arith.constant 0 : i32
    %c0_i32_0 = arith.constant 0 : i32
    %c0_i32_1 = arith.constant 0 : i32
    return %arg0, %c0_i32, %c0_i32_0 : i32, i32, i32
  }
}

</mosaic_0001>

<bundles_post_ra>
// kernel: tpu_custom_call.1
= control target key start
LH: loop header
LB: loop body
LE: loop exit
PB: predicated region body
PF: predicated region fallthrough
CT: control target
= control target key end

     0   :  { %9 = vsyncpa [#allocation3], 0  ;;  %s10669_s0 = inlined_call_operand.hbm [shape: f32[2,8,32], index: 0, kind: input, shape index: {}]   ;;  %s10670_s1 = inlined_call_operand.hbm [shape: f32[32,96], index: 1, kind: input, shape index: {}]   ;;  %s10671_s2 = inlined_call_operand.hbm [shape: f32[32,32], index: 2, kind: input, shape index: {}]   ;;  %s10672_s3 = inlined_call_operand.vmem [shape: f32[1,32], index: 3, kind: input, shape index: {}]   ;;  %s10673_s4 = inlined_call_operand.hbm [shape: f32[2,8,32], index: 4, kind: output, shape index: {}]  }
   0x1   :  { %11 = vsyncpa [#allocation3 + $0x1], 0 }
   0x2   :  { %12 = vsyncpa [#allocation6], 0 }
   0x3   :  { %13 = vsyncpa [#allocation4], 0 }
   0x4   :  { %15 = vsyncpa [#allocation4 + $0x1], 0  ;;  %s9943_s15 = smov 0   ;;  %s9945_s16 = smov 0  }
   0x5   :  { %s9947_s17 = smov 0   ;;  %s9949_s18 = smov 0  }
   0x6 LB: > { %s9964_s19 = sadd.s32 4294967295, %s9878_s18   ;;  %s8716_s20 = sadd.s32 4294967294, %s9878_s18   ;;  %s9878_s18 = sphi %s9949_s18, %s10695_s18   ;;  %s9874_s17 = sphi %s9947_s17, %s10694_s17   ;;  %s9870_s16 = sphi %s9945_s16, %s10693_s16   ;;  %s9866_s15 = sphi %s9943_s15, %s10692_s15  }
   0x7   : > { %p41_p0 = scmp.ne.s32.totalorder %s9870_s16, %s9866_s15  ;;  %p10674_p1 = scmp.eq.s32.totalorder %s9964_s19, 0 }
   0x8   : > { %p134_p3 = scmp.eq.s32.totalorder %s8716_s20, 1  ;;  %p8717_p5 = scmp.ge.s32.totalorder %s9878_s18, 1 }
   0x9   : > { %p9973_p4 = por %p10674_p1, %p41_p0  ;;  %p141_p7 = scmp.lt.s32.totalorder %s9878_s18, 3 }
   0xa   : > { %p9978_p6 = por %p134_p3, %p41_p0  ;;  %s9880_s24 = smov [#allocation5]  }
   0xb   : > { %s10678_s21 = scalar_select %p9973_p4, 1, 0 }
   0xc   : > { %s10679_s22 = scalar_select %p9978_p6, 1, 0 }
   0xd   : > { %p9983_p8 = pnand %p8717_p5, %p141_p7  ;;  %s153_s25 = sshll.u32 %s9880_s24, 4  ;;  %s154_s25 = int_to_ptr.vmem [resolvable:$true] %s153_s25 }
   0xe   : > { %s9881_s27 = smov [#allocation7]   ;;  %s9741_s29 = scalar_lea.vmem %s154_s25, 512 }
   0xf   : > { %s10680_s23 = scalar_select %p9983_p8, 1, 0 }
  0x10   : > { %p9609_p9 = pneg %p9983_p8  ;;  %s166_s28 = sshll.u32 %s9881_s27, 4  ;;  %s167_s28 = int_to_ptr.vmem [resolvable:$true] %s166_s28 }
  0x11   : > { %p9742_p13 = scmp.ne.s32.totalorder %s154_s25, %s9741_s29  ;;  %p9749_p5 = scmp.lt.s32.totalorder %s154_s25, %s154_s25 }
  0x12   : > { %p9992_p11 = pnand %p9609_p9, %p10674_p1  ;;  %p9750_p7 = scmp.lt.s32.totalorder %s9741_s29, %s9741_s29 }
  0x14   : > { %p9732_p12 = pneg %p9992_p11  ;;  %p9751_p10 = por %p9750_p7, %p9749_p5 }
  0x16   : > { %p9744_p0 = pnand %p9742_p13, %p9732_p12 }
  0x18   : > { %p9745_p3 = pneg %p9744_p0 }
  0x1a   : > { %p9752_p9 = pnand %p9751_p10, %p9745_p3 }
  0x1c   : > { %9755 = shalt.err (!%p9752_p9)
}
  0x1d   : > { %s9882_s30 = smov 128   ;;  %s9883_s5 = smov 8  }
  0x1e   : > { %9612 = dma.hbm_to_vmem [thread:$0]  (!%p9992_p11), %s10670_s1, 512, %s154_s25, [#allocation6], %s9882_s30, %s9882_s30, %s9883_s5  }
  0x1f   : > { %s9767_s8 = scalar_lea.vmem %s167_s28, 512  ;;  %p9775_p2 = scmp.lt.s32.totalorder %s167_s28, %s167_s28 }
  0x20   : > { %p9768_p1 = scmp.ne.s32.totalorder %s167_s28, %s9767_s8  ;;  %p9776_p6 = scmp.lt.s32.totalorder %s9767_s8, %s9767_s8 }
  0x22   : > { %p9770_p13 = pnand %p9768_p1, %p9732_p12  ;;  %p9777_p5 = por %p9776_p6, %p9775_p2 }
  0x24   : > { %p9771_p0 = pneg %p9770_p13 }
  0x26   : > { %p9778_p10 = pnand %p9777_p5, %p9771_p0 }
  0x28   : > { %9781 = shalt.err (!%p9778_p10)
}
  0x29   : > { %9615 = dma.hbm_to_vmem [thread:$0]  (!%p9992_p11), %s10671_s2, 512, %s167_s28, [#allocation6], %s9882_s30, %s9882_s30, %s9883_s5  }
  0x2a   : > { %s10015_s11 = sadd.s32 1, %s9878_s18   ;;  %s28_s12 = sadd.s32 1, %s9874_s17 }
  0x2b   : > { %s25_s13 = ssub.s32 %s9878_s18, %s10015_s11  ;;  %p35_p1 = scmp.ne.s32.totalorder %s9874_s17, %s9870_s16 }
  0x2c   : > { %p26_p2 = scmp.eq.s32.totalorder %s25_s13, 0  ;;  %p36_p6 = scmp.eq.s32.totalorder %s9878_s18, 0 }
  0x2d   : > { %p10682_p12 = scmp.eq.s32.totalorder %s9964_s19, 1  ;;  %p9626_p7 = scmp.lt.s32.totalorder %s9878_s18, 2 }
  0x2e   : > { %s10031_s20 = scalar_select %p26_p2, %s9874_s17, %s28_s12  }
  0x2f   : > { %p10025_p3 = por %p10682_p12, %p35_p1  ;;  %p37_p9 = por %p36_p6, %p35_p1 }
  0x30   : > { %s183_s24 = sand.u32 1, %s9874_s17   ;;  %s8722_s26 = sshll.u32 %s9878_s18, 7 }
  0x31   : > { %s10683_s14 = scalar_select %p10025_p3, 1, 0 }
  0x32   : > { %s8721_s25 = sshll.u32 %s183_s24, 3  ;;  %s10038_s29 = scalar_lea.hbm %s10669_s0, %s8722_s26 }
  0x33   : > { %s187_s30 = scalar_lea.vmem [#allocation2], %s8721_s25  ;;  %p10040_p11 = pnand %p9626_p7, %p37_p9 }
  0x34   : > { %s194_s5 = sshll.u32 %s187_s30, 4  ;;  %s184_s7 = scalar_lea.sflag [#allocation3], %s183_s24  ;;  %s195_s5 = int_to_ptr.vmem [resolvable:$true] %s194_s5 }
  0x35   : > { %s9782_s8 = scalar_lea.hbm %s10038_s29, 128  ;;  %p9784_p0 = pneg %p10040_p11 }
  0x36   : > { %p9783_p13 = scmp.ne.s32.totalorder %s10038_s29, %s9782_s8  ;;  %s9787_s12 = scalar_lea.hbm %s10669_s0, 256 }
  0x37   : > { %p9788_p1 = scmp.lt.s32.totalorder %s10038_s29, %s10669_s0  ;;  %p9789_p2 = scmp.lt.s32.totalorder %s9787_s12, %s9782_s8 }
  0x38   : > { %p9785_p5 = pnand %p9784_p0, %p9783_p13 }
  0x39   : > { %p9790_p6 = por %p9789_p2, %p9788_p1 }
  0x3a   : > { %p9786_p10 = pneg %p9785_p5 }
  0x3c   : > { %p9791_p12 = pnand %p9790_p6, %p9786_p10 }
  0x3e   : > { %9794 = shalt.err (!%p9791_p12)
}
  0x3f   : > { %s9795_s26 = scalar_lea.vmem %s195_s5, 128  ;;  %s9884_s24 = smov [#allocation2]  }
  0x40   : > { %p9796_p7 = scmp.ne.s32.totalorder %s195_s5, %s9795_s26  ;;  %s9800_s27 = sshll.u32 %s9884_s24, 4  ;;  %s9801_s27 = int_to_ptr.vmem [resolvable:$false] %s9800_s27 }
  0x41   : > { %s9802_s28 = scalar_lea.vmem %s9801_s27, 256  ;;  %p9803_p13 = scmp.lt.s32.totalorder %s195_s5, %s9801_s27 }
  0x42   : > { %p9798_p9 = pnand %p9796_p7, %p9784_p0  ;;  %p9804_p5 = scmp.lt.s32.totalorder %s9802_s28, %s9795_s26 }
  0x44   : > { %p9799_p3 = pneg %p9798_p9  ;;  %p9805_p4 = por %p9804_p5, %p9803_p13 }
  0x46   : > { %p9806_p8 = pnand %p9805_p4, %p9799_p3 }
  0x48   : > { %9809 = shalt.err (!%p9806_p8)
}
  0x49   : > { %9619 = dma.hbm_to_vmem [thread:$0]  (!%p10040_p11), %s10038_s29, 128, %s195_s5, %s184_s7  }
  0x4a   : > { %p10685_p10 = scmp.ne.s32.totalorder %s10680_s23, 0 }
  0x4b   : > { %s10061_s30 = sand.u32 (!%p10685_p10), 1, %s9870_s16   ;;  %p10686_p4 = scmp.ne.s32.totalorder (!%p10685_p10), %s10678_s21, 0 }
  0x4c   : > { %203 = sbr.rel (%p10685_p10) target bundleno = 5313 (0x14c1), region = 36  ;;  %s8724_s8 = sshll.u32 (!%p10685_p10), %s10061_s30, 3 }
  0x4d   : > { %s206_s9 = scalar_lea.sflag (!%p10685_p10), [#allocation3], %s10061_s30  ;;  %s209_s10 = scalar_lea.vmem (!%p10685_p10), [#allocation2], %s8724_s8 }
  0x51   : > { %9853 = dma.done.wait (%p10686_p4), %s206_s9, 128  }
  0x52   : > { %9855 = vsyncadd (%p10686_p4), %s206_s9, 4294967168  ;;  %p10687_p8 = scmp.eq.s32.totalorder %s9964_s19, 0 }
  0x54   : > { %9857 = dma.done.wait (%p10687_p8), [#allocation6], 1024   ;;  %p10688_p3 = pmov %p10687_p8 }
  0x55   : > { %v9885_v0 = vmov 0.0   ;;  %vm9886_vm0 = vmmov 0   ;;  %vm247_vm1 = vcmask 261120   ;;  %v246_v1 = vld [vmem:[#allocation5 + $0x18] sm:$0xff]  ;;  %v245_v2 = vld [vmem:[#allocation5 + $0x10] sm:$0xff]  ;;  %v244_v3 = vld [vmem:[#allocation5 + $0x8] sm:$0xff] }
  0x56   : > { %9859 = vsyncadd (%p10688_p3), [#allocation6], 4294966272  ;;  %8985 = vmatprep.subr.mxu0 %v9885_v0  ;;  %8996 = vmatprep.subr.mxu1 %v9885_v0  ;;  %v10081_v4 = vand.u32 4294901760, %v246_v1  ;;  %v10083_v5 = vand.u32 4294901760, %v245_v2  ;;  %v10085_v6 = vand.u32 4294901760, %v244_v3  ;;  %v243_v7 = vld [vmem:[#allocation5] sm:$0xff] }
  0x57   : > { %8993 = vmatprep.mubr.msk.f32.mxu0 %vm9886_vm0, %v9885_v0  ;;  %9004 = vmatprep.mubr.msk.f32.mxu1 %vm9886_vm0, %v9885_v0  ;;  %v242_v8 = vld [vmem:[%s209_s10] sm:$0xff]  ;;  %v10087_v9 = vand.u32 4294901760, %v243_v7  ;;  %s9887_s21 = smov 64   ;;  %s9888_s23 = smov 96   ;;  %vm739_vm2 = vcmask 31744   ;;  %vm1190_vm3 = vcmask 64512  }
  0x58   : > { %v249_v10 = vsel %vm247_vm1, %v242_v8, 0  ;;  %8986 = vmatpush3.msra.mxu0 %v10081_v4  ;;  %v356_v11 = vsub.f32 %v246_v1, %v10081_v4  ;;  %v363_v13 = vsub.f32 %v245_v2, %v10083_v5  ;;  %v370_v14 = vsub.f32 %v244_v3, %v10085_v6  ;;  %s9889_s29 = smov 92   ;;  %s9890_s5 = smov 124  }
  0x59   : > { %v10092_v12 = vand.u32 4294901760, %v249_v10  ;;  %8987 = vmatprep.subr.mxu0 %v9885_v0  ;;  %v377_v15 = vsub.f32 %v243_v7, %v10087_v9  ;;  %s9891_s6 = smov 60   ;;  %s9892_s7 = smov 88   ;;  %vm8103_vm4 = vcmask 97280   ;;  %vm8105_vm5 = vcmask 130048  }
  0x5a   : > { %8988 = vmatpush3.msra.mxu0 %v10083_v5  ;;  %v357_v16 = vand.u32 4294901760, %v356_v11  ;;  %v364_v18 = vand.u32 4294901760, %v363_v13  ;;  %v371_v19 = vand.u32 4294901760, %v370_v14  ;;  %s9893_s12 = smov 120   ;;  %s9894_s13 = smov 56   ;;  %vm8107_vm6 = vcmask 162816  }
  0x5b   : > { %v321_v17 = vsub.f32 %v249_v10, %v10092_v12  ;;  %8989 = vmatprep.subr.mxu0 %v9885_v0  ;;  %v378_v20 = vand.u32 4294901760, %v377_v15  ;;  %s9895_s25 = smov 84   ;;  %s9896_s26 = smov 116   ;;  %vm8109_vm7 = vcmask 195584   ;;  %vm8111_vm8 = vcmask 228352  }
  0x5c   : > { %8990 = vmatpush3.msra.mxu0 %v10085_v6  ;;  %v358_v21 = vsub.f32 %v356_v11, %v357_v16  ;;  %v365_v23 = vsub.f32 %v363_v13, %v364_v18  ;;  %v372_v24 = vsub.f32 %v370_v14, %v371_v19  ;;  %s9897_s24 = smov 52   ;;  %s9898_s27 = smov 80  }
  0x5d   : > { %v322_v22 = vand.u32 4294901760, %v321_v17  ;;  %8991 = vmatprep.subr.mxu0 %v9885_v0  ;;  %v379_v28 = vsub.f32 %v377_v15, %v378_v20  ;;  %s9899_s28 = smov 112   ;;  %s9900_s9 = smov 48  }
  0x5e   : > { %8992 = vmatpush3.msra.mxu0 %v10087_v9  ;;  %v359_v25 = vand.u32 4294901760, %v358_v21  ;;  %v366_v27 = vand.u32 4294901760, %v365_v23  ;;  %v373_v30 = vand.u32 4294901760, %v372_v24  ;;  %s9901_s10 = smov 76   ;;  %p10689_p0 = scmp.ne.s32.totalorder %s10683_s14, 0 }
  0x5f   : > { %v323_v26 = vsub.f32 %v321_v17, %v322_v22  ;;  %9007 = vmatprep.subr.mxu0 %v9885_v0  ;;  %v380_v31 = vand.u32 4294901760, %v379_v28 }
  0x60   : > { %8997 = vmatpush3.msra.mxu1 %v359_v25 }
  0x61   : > { %v324_v29 = vand.u32 4294901760, %v323_v26  ;;  %8998 = vmatprep.subr.mxu1 %v9885_v0 }
  0x62   : > { %8999 = vmatpush3.msra.mxu1 %v366_v27 }
  0x63   : > { %8994 = vmatmul.mubr.f32.vlgmr.msra.gmra.mxu0 %v324_v29  ;;  %9000 = vmatprep.subr.mxu1 %v9885_v0 }
  0x64   : > { %9008 = vmatpush3.msra.mxu0 %v356_v11  ;;  %9001 = vmatpush3.msra.mxu1 %v373_v30 }
  0x65   : > { %9009 = vmatprep.subr.mxu0 %v9885_v0  ;;  %9002 = vmatprep.subr.mxu1 %v9885_v0 }
  0x66   : > { %9010 = vmatpush3.msra.mxu0 %v363_v13  ;;  %9003 = vmatpush3.msra.mxu1 %v380_v31 }
  0x67   : > { %9011 = vmatprep.subr.mxu0 %v9885_v0  ;;  %9005 = vmatmul.mubr.f32.vlgmr.msra.gmra.mxu1 %v10092_v12 }
  0x68   : > { %9012 = vmatpush3.msra.mxu0 %v370_v14  ;;  %9018 = vmatprep.subr.mxu1 %v9885_v0 }
  0x69   : > { %9013 = vmatprep.subr.mxu0 %v9885_v0  ;;  %9015 = vmatprep.mubr.msk.f32.mxu0 %vm9886_vm0, %v9885_v0 }
  0x6a   : > { %9014 = vmatpush3.msra.mxu0 %v377_v15  ;;  %9019 = vmatpush3.msra.mxu1 %v10081_v4 }
  0x6b   : > { %9016 = vmatmul.mubr.f32.vlgmr.msra.gmra.mxu0 %v321_v17  ;;  %9020 = vmatprep.subr.mxu1 %v9885_v0 }
  0x6c   : > { %9029 = vmatprep.subr.mxu0 %v9885_v0  ;;  %9021 = vmatpush3.msra.mxu1 %v10083_v5 }
  0x6d   : > { %9030 = vmatpush3.msra.mxu0 %v357_v16  ;;  %9022 = vmatprep.subr.mxu1 %v9885_v0 }
  0x6e   : > { %9031 = vmatprep.subr.mxu0 %v9885_v0  ;;  %9023 = vmatpush3.msra.mxu1 %v10085_v6 }
  0x6f   : > { %9032 = vmatpush3.msra.mxu0 %v364_v18  ;;  %9024 = vmatprep.subr.mxu1 %v9885_v0 }
  0x70   : > { %9033 = vmatprep.subr.mxu0 %v9885_v0  ;;  %9025 = vmatpush3.msra.mxu1 %v10087_v9 }
  0x71   : > { %9026 = vmatprep.mubr.msk.f32.mxu1 %vm9886_vm0, %v9885_v0  ;;  %9034 = vmatpush3.msra.mxu0 %v371_v19 }
  0x72   : > { %9027 = vmatmul.mubr.f32.vlgmr.msra.gmra.mxu1 %v322_v22  ;;  %9035 = vmatprep.subr.mxu0 %v9885_v0 }
  0x73   : > { %9040 = vmatprep.subr.mxu1 %v9885_v0  ;;  %9036 = vmatpush3.msra.mxu0 %v378_v20 }
  0x74   : > { %9037 = vmatprep.mubr.msk.f32.mxu0 %vm9886_vm0, %v9885_v0  ;;  %9041 = vmatpush3.msra.mxu1 %v10081_v4 }
  0x75   : > { %9038 = vmatmul.mubr.f32.vlgmr.msra.gmra.mxu0 %v10092_v12  ;;  %9042 = vmatprep.subr.mxu1 %v9885_v0 }
  0x76   : > { %9048 = vmatprep.mubr.msk.f32.mxu1 %vm9886_vm0, %v9885_v0  ;;  %9043 = vmatpush3.msra.mxu1 %v10083_v5 }
  0x77   : > { %9051 = vmatprep.subr.mxu0 %v9885_v0  ;;  %9044 = vmatprep.subr.mxu1 %v9885_v0 }
  0x78   : > { %9053 = vmatprep.mubr.msk.f32.mxu0 %vm9886_vm0, %v9885_v0  ;;  %9045 = vmatpush3.msra.mxu1 %v10085_v6 }
  0x79   : > { %9046 = vmatprep.subr.mxu1 %v9885_v0 }
  0x7a   : > { %9047 = vmatpush3.msra.mxu1 %v10087_v9 }
  0x7b   : > { %9049 = vmatmul.mubr.f32.vlgmr.msra.gmra.mxu1 %v10092_v12  ;;  %9056 = vmatprep.subr.mxu1 %v9885_v0 }
  0x7c   : > { %9058 = vmatprep.mubr.msk.f32.mxu1 %vm9886_vm0, %v9885_v0 }
 0x123   : > { %v326_v32 = vpop.f32.mrf.mxu0 }
 0x125   : > { %v8995_v33 = vpop.f32.mrf.mxu0 }
 0x127   : > { %v417_v34 = vpop.f32.mrf.mxu1 }
 0x128   : > { %v418_v38 = vadd.f32 %v417_v34, %v326_v32 }
 0x129   : > { %v9006_v35 = vpop.f32.mrf.mxu1 }
 0x12b   : > { %v497_v36 = vpop.f32.mrf.mxu0 }
 0x12c   : > { %v498_v41 = vadd.f32 %v497_v36, %v418_v38 }
 0x12d   : > { %v9017_v37 = vpop.f32.mrf.mxu0 }
 0x132   : > { %v574_v39 = vpop.f32.mrf.mxu1 }
 0x133   : > { %v575_v43 = vadd.f32 %v574_v39, %v498_v41 }
 0x134   : > { %v9028_v40 = vpop.f32.mrf.mxu1 }
 0x135   : > { %v657_v42 = vpop.f32.mrf.mxu0 }
 0x136   : > { %v658_v45 = vadd.f32 %v657_v42, %v575_v43 }
 0x137   : > { %v9039_v44 = vpop.f32.mrf.mxu0 }
 0x13b   : > { %v732_v46 = vpop.f32.mrf.mxu1 }
 0x13c   : > { %v10148_v47 = vadd.f32 %v732_v46, %v658_v45 }
 0x13d   : > { %v9050_v48 = vpop.f32.mrf.mxu1 }
 0x13e   : > { %1202 = vrot.lane.b32.xlu1 %v10148_v47, %s9887_s21  ;;  %737 = vrot.lane.b32.xlu0 %v10148_v47, %s9888_s23  ;;  %v740_v49 = vsel %vm739_vm2, %v10148_v47, 0  ;;  %s9902_s21 = smov 108   ;;  %s9903_s23 = smov 44  }
 0x13f   : > { %v810_v50 = vand.u32 4294901760, %v740_v49 }
 0x141   : > { %v811_v51 = vsub.f32 %v740_v49, %v810_v50 }
 0x143   : > { %v812_v52 = vand.u32 4294901760, %v811_v51 }
 0x145   : > { %v813_v55 = vsub.f32 %v811_v51, %v812_v52 }
 0x147   : > { %v814_v59 = vand.u32 4294901760, %v813_v55 }
 0x1b0   : > { %v738_v53 = vpop.permute.xlu0 %737  ;;  %v1203_v57 = vpop.permute.xlu1 %1202 }
 0x1b1   : > { %v742_v54 = vsel %vm739_vm2, %v738_v53, 0  ;;  %v10156_v60 = vand.u32 4294901760, %v1203_v57 }
 0x1b2   : > { %v775_v56 = vand.u32 4294901760, %v742_v54 }
 0x1b3   : > { %v10162_v63 = vsub.f32 %v1203_v57, %v10156_v60 }
 0x1b4   : > { %v852_v58 = vsub.f32 %v742_v54, %v775_v56  ;;  %9052 = vmatpush3.xpose.msra.mxu0 %v775_v56 }
 0x1b5   : > { %9061 = vmatprep.subr.mxu0 %v9885_v0  ;;  %v1317_v2 = vand.u32 4294901760, %v10162_v63 }
 0x1b6   : > { %v853_v61 = vand.u32 4294901760, %v852_v58 }
 0x1b7   : > { %9054 = vmatmul.mubr.f32.vlgmr.msra.gmra.mxu0 %v814_v59  ;;  %v1318_v3 = vsub.f32 %v10162_v63, %v1317_v2 }
 0x1b8   : > { %v854_v62 = vsub.f32 %v852_v58, %v853_v61  ;;  %9062 = vmatpush3.xpose.msra.mxu0 %v852_v58  ;;  %9063 = vmatprep.mubr.msk.f32.mxu0 %vm9886_vm0, %v9885_v0 }
 0x1b9   : > { %9071 = vmatprep.subr.mxu0 %v9885_v0  ;;  %v1319_v4 = vand.u32 4294901760, %v1318_v3 }
 0x1ba   : > { %v855_v1 = vand.u32 4294901760, %v854_v62 }
 0x1bb   : > { %9064 = vmatmul.mubr.f32.vlgmr.msra.gmra.mxu0 %v811_v51 }
 0x1bc   : > { %9057 = vmatpush3.xpose.msra.mxu1 %v855_v1  ;;  %9072 = vmatpush3.xpose.msra.mxu0 %v853_v61 }
 0x1bd   : > { %9073 = vmatprep.mubr.msk.f32.mxu0 %vm9886_vm0, %v9885_v0  ;;  %9066 = vmatprep.subr.mxu1 %v9885_v0 }
 0x1be   : > { %9081 = vmatprep.subr.mxu0 %v9885_v0 }
 0x1bf   : > { %9059 = vmatmul.mubr.f32.vlgmr.msra.gmra.mxu1 %v810_v50  ;;  %9074 = vmatmul.mubr.f32.vlgmr.msra.gmra.mxu0 %v810_v50 }
 0x1c0   : > { %9067 = vmatpush3.xpose.msra.mxu1 %v775_v56  ;;  %9082 = vmatpush3.msra.mxu0 %v10156_v60 }
 0x1c1   : > { %9068 = vmatprep.mubr.msk.f32.mxu1 %vm9886_vm0, %v9885_v0  ;;  %9076 = vmatprep.subr.mxu1 %v9885_v0 }
 0x1c2   : > { %9083 = vmatprep.mubr.msk.f32.mxu0 %vm9886_vm0, %v9885_v0  ;;  %9091 = vmatprep.subr.mxu0 %v9885_v0 }
 0x1c3   : > { %9069 = vmatmul.mubr.f32.vlgmr.msra.gmra.mxu1 %v812_v52 }
 0x1c4   : > { %9077 = vmatpush3.xpose.msra.mxu1 %v775_v56  ;;  %9078 = vmatprep.mubr.msk.f32.mxu1 %vm9886_vm0, %v9885_v0 }
 0x1c5   : > { %9086 = vmatprep.subr.mxu1 %v9885_v0 }
 0x1c7   : > { %9079 = vmatmul.mubr.f32.vlgmr.msra.gmra.mxu1 %v810_v50 }
 0x1c8   : > { %9087 = vmatpush3.msra.mxu1 %v1319_v4  ;;  %9088 = vmatprep.mubr.msk.f32.mxu1 %vm9886_vm0, %v9885_v0 }
 0x1c9   : > { %9096 = vmatprep.subr.mxu1 %v9885_v0 }
 0x277   : > { %v816_v5 = vpop.f32.mrf.mxu0 }
 0x279   : > { %v9055_v6 = vpop.f32.mrf.mxu0 }
 0x27b   : > { %v966_v7 = vpop.f32.mrf.mxu0 }
 0x27d   : > { %v9065_v8 = vpop.f32.mrf.mxu0 }
 0x27f   : > { %v892_v9 = vpop.f32.mrf.mxu1  ;;  %v1114_v10 = vpop.f32.mrf.mxu0 }
 0x280   : > { %v893_v11 = vadd.f32 %v892_v9, %v816_v5 }
 0x281   : > { %v9060_v12 = vpop.f32.mrf.mxu1  ;;  %v9075_v13 = vpop.f32.mrf.mxu0 }
 0x282   : > { %v967_v14 = vadd.f32 %v966_v7, %v893_v11 }
 0x283   : > { %v1040_v15 = vpop.f32.mrf.mxu1 }
 0x284   : > { %v1041_v16 = vadd.f32 %v1040_v15, %v967_v14 }
 0x285   : > { %v9070_v17 = vpop.f32.mrf.mxu1 }
 0x286   : > { %v1115_v18 = vadd.f32 %v1114_v10, %v1041_v16 }
 0x287   : > { %v1186_v19 = vpop.f32.mrf.mxu1 }
 0x288   : > { %v1187_v20 = vadd.f32 %v1186_v19, %v1115_v18 }
 0x289   : > { %v9080_v21 = vpop.f32.mrf.mxu1 }
 0x28a   : > { %v1191_v22 = vsel %vm1190_vm3, %v1187_v20, -inf }
 0x28b   : > { %1192 = vmax.xlane.f32.xlu0 %v1191_v22 }
 0x314   : > { %v1193_v23 = vpop.xlane.xlu0 %1192 }
 0x315   : > { %v1194_v24 = vsub.f32 %v1187_v20, %v1193_v23 }
 0x317   : > { %v1195_v25 = vmul.f32 1.442695, %v1194_v24 }
 0x319   : > { %9698 = vpow2.f32 %v1195_v25 }
 0x326   : > { %v9699_v26 = vpop.eup %9698 }
 0x327   : > { %v1197_v27 = vsel %vm1190_vm3, %v9699_v26, 0.0 }
 0x328   : > { %1198 = vadd.xlane.f32.xlu1 %v1197_v27 }
 0x339   : > { %1656 = vrot.lane.b32.xlu1 %v10148_v47, %s9889_s29  ;;  %s9904_s29 = smov 72  }
 0x33d   : > { %1654 = vrot.lane.b32.xlu1 %v10148_v47, %s9890_s5  ;;  %s9905_s5 = smov 104  }
 0x3b1   : > { %v1199_v28 = vpop.xlane.xlu1 %1198 }
 0x3b2   : > { %9700 = vrcp.f32 %v1199_v28 }
 0x3b5   : > { %v1657_v29 = vpop.permute.xlu1 %1656 }
 0x3b6   : > { %v1660_v30 = vsel %vm739_vm2, %v1657_v29, 0 }
 0x3b7   : > { %v1693_v31 = vand.u32 4294901760, %v1660_v30 }
 0x3b9   : > { %v1770_v33 = vsub.f32 %v1660_v30, %v1693_v31  ;;  %v1655_v35 = vpop.permute.xlu1 %1654 }
 0x3ba   : > { %v1658_v39 = vsel %vm739_vm2, %v1655_v35, 0 }
 0x3bb   : > { %v1771_v38 = vand.u32 4294901760, %v1770_v33  ;;  %v1728_v41 = vand.u32 4294901760, %v1658_v39 }
 0x3bd   : > { %v1772_v43 = vsub.f32 %v1770_v33, %v1771_v38  ;;  %v1729_v45 = vsub.f32 %v1658_v39, %v1728_v41 }
 0x3bf   : > { %v9701_v32 = vpop.eup %9700  ;;  %v1773_v48 = vand.u32 4294901760, %v1772_v43  ;;  %v1730_v49 = vand.u32 4294901760, %v1729_v45 }
 0x3c0   : > { %v1201_v34 = vmul.f32 %v9701_v32, %v9699_v26 }
 0x3c1   : > { %v1731_v50 = vsub.f32 %v1729_v45, %v1730_v49 }
 0x3c2   : > { %v1206_v36 = vsel %vm1190_vm3, %v1201_v34, 0 }
 0x3c3   : > { %v1274_v37 = vand.u32 4294901760, %v1206_v36  ;;  %v1732_v51 = vand.u32 4294901760, %v1731_v50 }
 0x3c5   : > { %v1275_v40 = vsub.f32 %v1206_v36, %v1274_v37  ;;  %9089 = vmatmul.mubr.f32.vlgmr.msra.gmra.mxu1 %v1274_v37 }
 0x3c6   : > { %9097 = vmatpush3.msra.mxu1 %v10156_v60  ;;  %9098 = vmatprep.mubr.msk.f32.mxu1 %vm9886_vm0, %v9885_v0 }
 0x3c7   : > { %9106 = vmatprep.subr.mxu1 %v9885_v0  ;;  %v1276_v42 = vand.u32 4294901760, %v1275_v40 }
 0x3c9   : > { %9099 = vmatmul.mubr.f32.vlgmr.msra.gmra.mxu1 %v1276_v42  ;;  %v1277_v44 = vsub.f32 %v1275_v40, %v1276_v42 }
 0x3ca   : > { %9107 = vmatpush3.msra.mxu1 %v10156_v60  ;;  %9108 = vmatprep.mubr.msk.f32.mxu1 %vm9886_vm0, %v9885_v0 }
 0x3cb   : > { %9116 = vmatprep.subr.mxu1 %v9885_v0  ;;  %v1278_v46 = vand.u32 4294901760, %v1277_v44 }
 0x3cd   : > { %9084 = vmatmul.mubr.f32.vlgmr.msra.gmra.mxu0 %v1278_v46  ;;  %9109 = vmatmul.mubr.f32.vlgmr.msra.gmra.mxu1 %v1274_v37 }
 0x3ce   : > { %9092 = vmatpush3.msra.mxu0 %v10162_v63  ;;  %9117 = vmatpush3.xpose.msra.mxu1 %v1773_v48 }
 0x3cf   : > { %9093 = vmatprep.mubr.msk.f32.mxu0 %vm9886_vm0, %v9885_v0  ;;  %9101 = vmatprep.subr.mxu0 %v9885_v0 }
 0x3d0   : > { %9118 = vmatprep.mubr.msk.f32.mxu1 %vm9886_vm0, %v9885_v0  ;;  %9126 = vmatprep.subr.mxu1 %v9885_v0 }
 0x3d1   : > { %9094 = vmatmul.mubr.f32.vlgmr.msra.gmra.mxu0 %v1275_v40  ;;  %9119 = vmatmul.mubr.f32.vlgmr.msra.gmra.mxu1 %v1728_v41 }
 0x3d2   : > { %9102 = vmatpush3.msra.mxu0 %v1317_v2  ;;  %9127 = vmatpush3.xpose.msra.mxu1 %v1693_v31 }
 0x3d3   : > { %9103 = vmatprep.mubr.msk.f32.mxu0 %vm9886_vm0, %v9885_v0  ;;  %9111 = vmatprep.subr.mxu0 %v9885_v0 }
 0x3d4   : > { %9128 = vmatprep.mubr.msk.f32.mxu1 %vm9886_vm0, %v9885_v0  ;;  %9136 = vmatprep.subr.mxu1 %v9885_v0 }
 0x3d5   : > { %9104 = vmatmul.mubr.f32.vlgmr.msra.gmra.mxu0 %v1274_v37  ;;  %9129 = vmatmul.mubr.f32.vlgmr.msra.gmra.mxu1 %v1730_v49 }
 0x3d6   : > { %9112 = vmatpush3.xpose.msra.mxu0 %v1693_v31  ;;  %9137 = vmatpush3.xpose.msra.mxu1 %v1693_v31 }
 0x3d7   : > { %9113 = vmatprep.mubr.msk.f32.mxu0 %vm9886_vm0, %v9885_v0  ;;  %9121 = vmatprep.subr.mxu0 %v9885_v0 }
 0x3d8   : > { %9138 = vmatprep.mubr.msk.f32.mxu1 %vm9886_vm0, %v9885_v0  ;;  %9146 = vmatprep.subr.mxu1 %v9885_v0 }
 0x3d9   : > { %9114 = vmatmul.mubr.f32.vlgmr.msra.gmra.mxu0 %v1732_v51  ;;  %9139 = vmatmul.mubr.f32.vlgmr.msra.gmra.mxu1 %v1728_v41 }
 0x3da   : > { %9122 = vmatpush3.xpose.msra.mxu0 %v1770_v33  ;;  %9123 = vmatprep.mubr.msk.f32.mxu0 %vm9886_vm0, %v9885_v0 }
 0x3db   : > { %9131 = vmatprep.subr.mxu0 %v9885_v0  ;;  %9148 = vmatprep.mubr.msk.f32.mxu1 %vm9886_vm0, %v9885_v0 }
 0x3dd   : > { %9124 = vmatmul.mubr.f32.vlgmr.msra.gmra.mxu0 %v1729_v45 }
 0x3de   : > { %9132 = vmatpush3.xpose.msra.mxu0 %v1771_v38  ;;  %9133 = vmatprep.mubr.msk.f32.mxu0 %vm9886_vm0, %v9885_v0 }
 0x3df   : > { %9141 = vmatprep.subr.mxu0 %v9885_v0 }
 0x3e1   : > { %9134 = vmatmul.mubr.f32.vlgmr.msra.gmra.mxu0 %v1728_v41 }
 0x3e2   : > { %9143 = vmatprep.mubr.msk.f32.mxu0 %vm9886_vm0, %v9885_v0 }
 0x485   : > { %v1356_v52 = vpop.f32.mrf.mxu1 }
 0x487   : > { %v9090_v53 = vpop.f32.mrf.mxu1 }
 0x489   : > { %v1504_v54 = vpop.f32.mrf.mxu1 }
 0x48b   : > { %v9100_v55 = vpop.f32.mrf.mxu1 }
 0x48d   : > { %v1280_v56 = vpop.f32.mrf.mxu0  ;;  %v1650_v57 = vpop.f32.mrf.mxu1 }
 0x48e   : > { %v1357_v58 = vadd.f32 %v1356_v52, %v1280_v56 }
 0x48f   : > { %v9085_v59 = vpop.f32.mrf.mxu0  ;;  %v9110_v60 = vpop.f32.mrf.mxu1 }
 0x491   : > { %v1430_v61 = vpop.f32.mrf.mxu0  ;;  %v1810_v62 = vpop.f32.mrf.mxu1 }
 0x492   : > { %v1431_v63 = vadd.f32 %v1430_v61, %v1357_v58 }
 0x493   : > { %v9095_v1 = vpop.f32.mrf.mxu0  ;;  %v9120_v2 = vpop.f32.mrf.mxu1 }
 0x494   : > { %v1505_v3 = vadd.f32 %v1504_v54, %v1431_v63 }
 0x495   : > { %v1578_v4 = vpop.f32.mrf.mxu0  ;;  %v1958_v5 = vpop.f32.mrf.mxu1 }
 0x496   : > { %v1579_v6 = vadd.f32 %v1578_v4, %v1505_v3 }
 0x497   : > { %v9105_v7 = vpop.f32.mrf.mxu0  ;;  %v9130_v8 = vpop.f32.mrf.mxu1 }
 0x498   : > { %v10231_v9 = vadd.f32 %v1650_v57, %v1579_v6 }
 0x499   : > { %v1734_v10 = vpop.f32.mrf.mxu0  ;;  %v2104_v11 = vpop.f32.mrf.mxu1 }
 0x49a   : > { %v1811_v14 = vadd.f32 %v1810_v62, %v1734_v10 }
 0x49b   : > { %v9115_v12 = vpop.f32.mrf.mxu0  ;;  %v9140_v13 = vpop.f32.mrf.mxu1 }
 0x49d   : > { %v1884_v15 = vpop.f32.mrf.mxu0 }
 0x49e   : > { %v1885_v16 = vadd.f32 %v1884_v15, %v1811_v14 }
 0x49f   : > { %v9125_v17 = vpop.f32.mrf.mxu0 }
 0x4a0   : > { %v1959_v18 = vadd.f32 %v1958_v5, %v1885_v16 }
 0x4a1   : > { %v2032_v19 = vpop.f32.mrf.mxu0 }
 0x4a2   : > { %v2033_v20 = vadd.f32 %v2032_v19, %v1959_v18 }
 0x4a3   : > { %v9135_v21 = vpop.f32.mrf.mxu0 }
 0x4a4   : > { %v2105_v22 = vadd.f32 %v2104_v11, %v2033_v20 }
 0x4a6   : > { %v2108_v23 = vsel %vm1190_vm3, %v2105_v22, -inf }
 0x4a7   : > { %2109 = vmax.xlane.f32.xlu1 %v2108_v23 }
 0x530   : > { %v2110_v24 = vpop.xlane.xlu1 %2109 }
 0x531   : > { %v2111_v25 = vsub.f32 %v2105_v22, %v2110_v24 }
 0x533   : > { %v2112_v26 = vmul.f32 1.442695, %v2111_v25 }
 0x535   : > { %9702 = vpow2.f32 %v2112_v26 }
 0x542   : > { %v9703_v27 = vpop.eup %9702 }
 0x543   : > { %v2114_v28 = vsel %vm1190_vm3, %v9703_v27, 0.0 }
 0x544   : > { %2115 = vadd.xlane.f32.xlu0 %v2114_v28 }
 0x55a   : > { %2119 = vrot.lane.b32.xlu0 %v10148_v47, %s9891_s6  ;;  %s9906_s6 = smov 40  }
 0x55e   : > { %2573 = vrot.lane.b32.xlu0 %v10148_v47, %s9892_s7  ;;  %s9907_s7 = smov 68  }
 0x562   : > { %2571 = vrot.lane.b32.xlu0 %v10148_v47, %s9893_s12  ;;  %s9908_s12 = smov 100  }
 0x5cd   : > { %v2116_v29 = vpop.xlane.xlu0 %2115 }
 0x5ce   : > { %9704 = vrcp.f32 %v2116_v29 }
 0x5d1   : > { %v2120_v30 = vpop.permute.xlu0 %2119 }
 0x5d2   : > { %v2156_v31 = vand.u32 4294901760, %v2120_v30 }
 0x5d4   : > { %v2233_v32 = vsub.f32 %v2120_v30, %v2156_v31  ;;  %9142 = vmatpush3.msra.mxu0 %v2156_v31 }
 0x5d5   : > { %v2574_v33 = vpop.permute.xlu0 %2573  ;;  %9151 = vmatprep.subr.mxu0 %v9885_v0 }
 0x5d6   : > { %v2234_v34 = vand.u32 4294901760, %v2233_v32  ;;  %v2577_v35 = vsel %vm739_vm2, %v2574_v33, 0 }
 0x5d7   : > { %v2610_v37 = vand.u32 4294901760, %v2577_v35 }
 0x5d8   : > { %v2235_v36 = vsub.f32 %v2233_v32, %v2234_v34 }
 0x5d9   : > { %v2687_v40 = vsub.f32 %v2577_v35, %v2610_v37  ;;  %v2572_v42 = vpop.permute.xlu0 %2571 }
 0x5da   : > { %v2236_v38 = vand.u32 4294901760, %v2235_v36  ;;  %v2575_v46 = vsel %vm739_vm2, %v2572_v42, 0 }
 0x5db   : > { %v9705_v39 = vpop.eup %9704  ;;  %v2688_v45 = vand.u32 4294901760, %v2687_v40  ;;  %v2645_v49 = vand.u32 4294901760, %v2575_v46 }
 0x5dc   : > { %9147 = vmatpush3.msra.mxu1 %v2236_v38  ;;  %v2118_v41 = vmul.f32 %v9705_v39, %v9703_v27 }
 0x5dd   : > { %9156 = vmatprep.subr.mxu1 %v9885_v0  ;;  %v2689_v51 = vsub.f32 %v2687_v40, %v2688_v45  ;;  %v2646_v53 = vsub.f32 %v2575_v46, %v2645_v49 }
 0x5de   : > { %v2123_v43 = vsel %vm1190_vm3, %v2118_v41, 0 }
 0x5df   : > { %v2191_v44 = vand.u32 4294901760, %v2123_v43  ;;  %v2690_v55 = vand.u32 4294901760, %v2689_v51  ;;  %v2647_v56 = vand.u32 4294901760, %v2646_v53 }
 0x5e1   : > { %v2192_v48 = vsub.f32 %v2123_v43, %v2191_v44  ;;  %9149 = vmatmul.mubr.f32.vlgmr.msra.gmra.mxu1 %v2191_v44  ;;  %v2648_v57 = vsub.f32 %v2646_v53, %v2647_v56 }
 0x5e2   : > { %9157 = vmatpush3.msra.mxu1 %v2156_v31  ;;  %9158 = vmatprep.mubr.msk.f32.mxu1 %vm9886_vm0, %v9885_v0 }
 0x5e3   : > { %9166 = vmatprep.subr.mxu1 %v9885_v0  ;;  %v2193_v50 = vand.u32 4294901760, %v2192_v48  ;;  %v2649_v58 = vand.u32 4294901760, %v2648_v57 }
 0x5e5   : > { %9159 = vmatmul.mubr.f32.vlgmr.msra.gmra.mxu1 %v2193_v50  ;;  %v2194_v52 = vsub.f32 %v2192_v48, %v2193_v50 }
 0x5e6   : > { %9167 = vmatpush3.msra.mxu1 %v2156_v31  ;;  %9168 = vmatprep.mubr.msk.f32.mxu1 %vm9886_vm0, %v9885_v0 }
 0x5e7   : > { %9176 = vmatprep.subr.mxu1 %v9885_v0  ;;  %v2195_v54 = vand.u32 4294901760, %v2194_v52 }
 0x5e9   : > { %9144 = vmatmul.mubr.f32.vlgmr.msra.gmra.mxu0 %v2195_v54  ;;  %9169 = vmatmul.mubr.f32.vlgmr.msra.gmra.mxu1 %v2191_v44 }
 0x5ea   : > { %9152 = vmatpush3.msra.mxu0 %v2233_v32  ;;  %9177 = vmatpush3.xpose.msra.mxu1 %v2690_v55 }
 0x5eb   : > { %9153 = vmatprep.mubr.msk.f32.mxu0 %vm9886_vm0, %v9885_v0  ;;  %9161 = vmatprep.subr.mxu0 %v9885_v0 }
 0x5ec   : > { %9178 = vmatprep.mubr.msk.f32.mxu1 %vm9886_vm0, %v9885_v0  ;;  %9186 = vmatprep.subr.mxu1 %v9885_v0 }
 0x5ed   : > { %9154 = vmatmul.mubr.f32.vlgmr.msra.gmra.mxu0 %v2192_v48  ;;  %9179 = vmatmul.mubr.f32.vlgmr.msra.gmra.mxu1 %v2645_v49 }
 0x5ee   : > { %9162 = vmatpush3.msra.mxu0 %v2234_v34  ;;  %9187 = vmatpush3.xpose.msra.mxu1 %v2610_v37 }
 0x5ef   : > { %9163 = vmatprep.mubr.msk.f32.mxu0 %vm9886_vm0, %v9885_v0  ;;  %9171 = vmatprep.subr.mxu0 %v9885_v0 }
 0x5f0   : > { %9188 = vmatprep.mubr.msk.f32.mxu1 %vm9886_vm0, %v9885_v0  ;;  %9196 = vmatprep.subr.mxu1 %v9885_v0 }
 0x5f1   : > { %9164 = vmatmul.mubr.f32.vlgmr.msra.gmra.mxu0 %v2191_v44  ;;  %9189 = vmatmul.mubr.f32.vlgmr.msra.gmra.mxu1 %v2647_v56 }
 0x5f2   : > { %9172 = vmatpush3.xpose.msra.mxu0 %v2610_v37  ;;  %9197 = vmatpush3.xpose.msra.mxu1 %v2610_v37 }
 0x5f3   : > { %9173 = vmatprep.mubr.msk.f32.mxu0 %vm9886_vm0, %v9885_v0  ;;  %9181 = vmatprep.subr.mxu0 %v9885_v0 }
 0x5f4   : > { %9198 = vmatprep.mubr.msk.f32.mxu1 %vm9886_vm0, %v9885_v0  ;;  %9206 = vmatprep.subr.mxu1 %v9885_v0 }
 0x5f5   : > { %9174 = vmatmul.mubr.f32.vlgmr.msra.gmra.mxu0 %v2649_v58  ;;  %9199 = vmatmul.mubr.f32.vlgmr.msra.gmra.mxu1 %v2645_v49 }
 0x5f6   : > { %9182 = vmatpush3.xpose.msra.mxu0 %v2687_v40  ;;  %9183 = vmatprep.mubr.msk.f32.mxu0 %vm9886_vm0, %v9885_v0 }
 0x5f7   : > { %9191 = vmatprep.subr.mxu0 %v9885_v0  ;;  %9208 = vmatprep.mubr.msk.f32.mxu1 %vm9886_vm0, %v9885_v0 }
 0x5f9   : > { %9184 = vmatmul.mubr.f32.vlgmr.msra.gmra.mxu0 %v2646_v53 }
 0x5fa   : > { %9192 = vmatpush3.xpose.msra.mxu0 %v2688_v45  ;;  %9193 = vmatprep.mubr.msk.f32.mxu0 %vm9886_vm0, %v9885_v0 }
 0x5fb   : > { %9201 = vmatprep.subr.mxu0 %v9885_v0 }
 0x5fd   : > { %9194 = vmatmul.mubr.f32.vlgmr.msra.gmra.mxu0 %v2645_v49 }
 0x5fe   : > { %9203 = vmatprep.mubr.msk.f32.mxu0 %vm9886_vm0, %v9885_v0 }
 0x6a1   : > { %v2273_v59 = vpop.f32.mrf.mxu1 }
 0x6a3   : > { %v9150_v60 = vpop.f32.mrf.mxu1 }
 0x6a5   : > { %v2421_v61 = vpop.f32.mrf.mxu1 }
 0x6a7   : > { %v9160_v62 = vpop.f32.mrf.mxu1 }
 0x6a9   : > { %v2197_v63 = vpop.f32.mrf.mxu0  ;;  %v2567_v1 = vpop.f32.mrf.mxu1 }
 0x6aa   : > { %v2274_v2 = vadd.f32 %v2273_v59, %v2197_v63 }
 0x6ab   : > { %v9145_v3 = vpop.f32.mrf.mxu0  ;;  %v9170_v4 = vpop.f32.mrf.mxu1 }
 0x6ad   : > { %v2347_v5 = vpop.f32.mrf.mxu0  ;;  %v2727_v6 = vpop.f32.mrf.mxu1 }
 0x6ae   : > { %v2348_v7 = vadd.f32 %v2347_v5, %v2274_v2 }
 0x6af   : > { %v9155_v8 = vpop.f32.mrf.mxu0  ;;  %v9180_v10 = vpop.f32.mrf.mxu1 }
 0x6b0   : > { %v2422_v11 = vadd.f32 %v2421_v61, %v2348_v7 }
 0x6b1   : > { %v2495_v12 = vpop.f32.mrf.mxu0  ;;  %v2875_v13 = vpop.f32.mrf.mxu1 }
 0x6b2   : > { %v2496_v14 = vadd.f32 %v2495_v12, %v2422_v11 }
 0x6b3   : > { %v9165_v15 = vpop.f32.mrf.mxu0  ;;  %v9190_v16 = vpop.f32.mrf.mxu1 }
 0x6b4   : > { %v10277_v17 = vadd.f32 %v2567_v1, %v2496_v14 }
 0x6b5   : > { %v2651_v18 = vpop.f32.mrf.mxu0  ;;  %v3021_v19 = vpop.f32.mrf.mxu1 }
 0x6b6   : > { %v2728_v22 = vadd.f32 %v2727_v6, %v2651_v18 }
 0x6b7   : > { %v9175_v20 = vpop.f32.mrf.mxu0  ;;  %v9200_v21 = vpop.f32.mrf.mxu1 }
 0x6b9   : > { %v2801_v23 = vpop.f32.mrf.mxu0 }
 0x6ba   : > { %v2802_v24 = vadd.f32 %v2801_v23, %v2728_v22 }
 0x6bb   : > { %v9185_v25 = vpop.f32.mrf.mxu0 }
 0x6bc   : > { %v2876_v26 = vadd.f32 %v2875_v13, %v2802_v24 }
 0x6bd   : > { %v2949_v27 = vpop.f32.mrf.mxu0 }
 0x6be   : > { %v2950_v28 = vadd.f32 %v2949_v27, %v2876_v26 }
 0x6bf   : > { %v9195_v29 = vpop.f32.mrf.mxu0 }
 0x6c0   : > { %v3022_v30 = vadd.f32 %v3021_v19, %v2950_v28 }
 0x6c2   : > { %v3025_v31 = vsel %vm1190_vm3, %v3022_v30, -inf }
 0x6c3   : > { %3026 = vmax.xlane.f32.xlu1 %v3025_v31 }
 0x6d4   : > { %3036 = vrot.lane.b32.xlu1 %v10148_v47, %s9894_s13  ;;  %s9909_s13 = smov 12  }
 0x6d8   : > { %3490 = vrot.lane.b32.xlu1 %v10148_v47, %s9895_s25  ;;  %s9910_s25 = smov 36  }
 0x6dc   : > { %3488 = vrot.lane.b32.xlu1 %v10148_v47, %s9896_s26  ;;  %s9911_s26 = smov 4  }
 0x74c   : > { %v3027_v32 = vpop.xlane.xlu1 %3026 }
 0x74d   : > { %v3028_v33 = vsub.f32 %v3022_v30, %v3027_v32 }
 0x74f   : > { %v3029_v34 = vmul.f32 1.442695, %v3028_v33 }
 0x750   : > { %v3037_v35 = vpop.permute.xlu1 %3036 }
 0x751   : > { %9706 = vpow2.f32 %v3029_v34  ;;  %v3073_v36 = vand.u32 4294901760, %v3037_v35 }
 0x753   : > { %v3150_v37 = vsub.f32 %v3037_v35, %v3073_v36  ;;  %9202 = vmatpush3.msra.mxu0 %v3073_v36 }
 0x754   : > { %9211 = vmatprep.subr.mxu0 %v9885_v0  ;;  %v3491_v44 = vpop.permute.xlu1 %3490 }
 0x755   : > { %v3151_v38 = vand.u32 4294901760, %v3150_v37  ;;  %v3494_v45 = vsel %vm739_vm2, %v3491_v44, 0 }
 0x756   : > { %v3527_v46 = vand.u32 4294901760, %v3494_v45 }
 0x757   : > { %v3152_v39 = vsub.f32 %v3150_v37, %v3151_v38 }
 0x758   : > { %v3604_v49 = vsub.f32 %v3494_v45, %v3527_v46  ;;  %v3489_v51 = vpop.permute.xlu1 %3488 }
 0x759   : > { %v3153_v40 = vand.u32 4294901760, %v3152_v39  ;;  %v3492_v55 = vsel %vm739_vm2, %v3489_v51, 0 }
 0x75a   : > { %v3605_v54 = vand.u32 4294901760, %v3604_v49  ;;  %v3562_v57 = vand.u32 4294901760, %v3492_v55 }
 0x75b   : > { %9207 = vmatpush3.msra.mxu1 %v3153_v40 }
 0x75c   : > { %9216 = vmatprep.subr.mxu1 %v9885_v0  ;;  %v3606_v59 = vsub.f32 %v3604_v49, %v3605_v54  ;;  %v3563_v61 = vsub.f32 %v3492_v55, %v3562_v57 }
 0x75e   : > { %v9707_v41 = vpop.eup %9706  ;;  %v3607_v63 = vand.u32 4294901760, %v3606_v59  ;;  %v3564_v1 = vand.u32 4294901760, %v3563_v61 }
 0x75f   : > { %v3031_v42 = vsel %vm1190_vm3, %v9707_v41, 0.0 }
 0x760   : > { %3032 = vadd.xlane.f32.xlu0 %v3031_v42  ;;  %v3565_v2 = vsub.f32 %v3563_v61, %v3564_v1 }
 0x762   : > { %v3566_v3 = vand.u32 4294901760, %v3565_v2 }
 0x7e9   : > { %v3033_v43 = vpop.xlane.xlu0 %3032 }
 0x7ea   : > { %9708 = vrcp.f32 %v3033_v43 }
 0x7f7   : > { %v9709_v48 = vpop.eup %9708 }
 0x7f8   : > { %v3035_v50 = vmul.f32 %v9709_v48, %v9707_v41 }
 0x7fa   : > { %v3040_v52 = vsel %vm1190_vm3, %v3035_v50, 0 }
 0x7fb   : > { %v3108_v53 = vand.u32 4294901760, %v3040_v52 }
 0x7fd   : > { %v3109_v56 = vsub.f32 %v3040_v52, %v3108_v53  ;;  %9209 = vmatmul.mubr.f32.vlgmr.msra.gmra.mxu1 %v3108_v53 }
 0x7fe   : > { %9217 = vmatpush3.msra.mxu1 %v3073_v36  ;;  %9218 = vmatprep.mubr.msk.f32.mxu1 %vm9886_vm0, %v9885_v0 }
 0x7ff   : > { %9226 = vmatprep.subr.mxu1 %v9885_v0  ;;  %v3110_v58 = vand.u32 4294901760, %v3109_v56 }
 0x801   : > { %9219 = vmatmul.mubr.f32.vlgmr.msra.gmra.mxu1 %v3110_v58  ;;  %v3111_v60 = vsub.f32 %v3109_v56, %v3110_v58 }
 0x802   : > { %9227 = vmatpush3.msra.mxu1 %v3073_v36  ;;  %9228 = vmatprep.mubr.msk.f32.mxu1 %vm9886_vm0, %v9885_v0 }
 0x803   : > { %9236 = vmatprep.subr.mxu1 %v9885_v0  ;;  %v3112_v62 = vand.u32 4294901760, %v3111_v60 }
 0x805   : > { %9204 = vmatmul.mubr.f32.vlgmr.msra.gmra.mxu0 %v3112_v62  ;;  %9229 = vmatmul.mubr.f32.vlgmr.msra.gmra.mxu1 %v3108_v53 }
 0x806   : > { %9212 = vmatpush3.msra.mxu0 %v3150_v37  ;;  %9237 = vmatpush3.xpose.msra.mxu1 %v3607_v63 }
 0x807   : > { %9213 = vmatprep.mubr.msk.f32.mxu0 %vm9886_vm0, %v9885_v0  ;;  %9221 = vmatprep.subr.mxu0 %v9885_v0 }
 0x808   : > { %9238 = vmatprep.mubr.msk.f32.mxu1 %vm9886_vm0, %v9885_v0  ;;  %9246 = vmatprep.subr.mxu1 %v9885_v0 }
 0x809   : > { %9214 = vmatmul.mubr.f32.vlgmr.msra.gmra.mxu0 %v3109_v56  ;;  %9239 = vmatmul.mubr.f32.vlgmr.msra.gmra.mxu1 %v3562_v57 }
 0x80a   : > { %9222 = vmatpush3.msra.mxu0 %v3151_v38  ;;  %9247 = vmatpush3.xpose.msra.mxu1 %v3527_v46 }
 0x80b   : > { %9223 = vmatprep.mubr.msk.f32.mxu0 %vm9886_vm0, %v9885_v0  ;;  %9231 = vmatprep.subr.mxu0 %v9885_v0 }
 0x80c   : > { %9248 = vmatprep.mubr.msk.f32.mxu1 %vm9886_vm0, %v9885_v0  ;;  %9256 = vmatprep.subr.mxu1 %v9885_v0 }
 0x80d   : > { %9224 = vmatmul.mubr.f32.vlgmr.msra.gmra.mxu0 %v3108_v53  ;;  %9249 = vmatmul.mubr.f32.vlgmr.msra.gmra.mxu1 %v3564_v1 }
 0x80e   : > { %9232 = vmatpush3.xpose.msra.mxu0 %v3527_v46  ;;  %9257 = vmatpush3.xpose.msra.mxu1 %v3527_v46 }
 0x80f   : > { %9233 = vmatprep.mubr.msk.f32.mxu0 %vm9886_vm0, %v9885_v0  ;;  %9241 = vmatprep.subr.mxu0 %v9885_v0 }
 0x810   : > { %9258 = vmatprep.mubr.msk.f32.mxu1 %vm9886_vm0, %v9885_v0  ;;  %9266 = vmatprep.subr.mxu1 %v9885_v0 }
 0x811   : > { %9234 = vmatmul.mubr.f32.vlgmr.msra.gmra.mxu0 %v3566_v3  ;;  %9259 = vmatmul.mubr.f32.vlgmr.msra.gmra.mxu1 %v3562_v57 }
 0x812   : > { %9242 = vmatpush3.xpose.msra.mxu0 %v3604_v49  ;;  %9243 = vmatprep.mubr.msk.f32.mxu0 %vm9886_vm0, %v9885_v0 }
 0x813   : > { %9251 = vmatprep.subr.mxu0 %v9885_v0  ;;  %9268 = vmatprep.mubr.msk.f32.mxu1 %vm9886_vm0, %v9885_v0 }
 0x815   : > { %9244 = vmatmul.mubr.f32.vlgmr.msra.gmra.mxu0 %v3563_v61 }
 0x816   : > { %9252 = vmatpush3.xpose.msra.mxu0 %v3605_v54  ;;  %9253 = vmatprep.mubr.msk.f32.mxu0 %vm9886_vm0, %v9885_v0 }
 0x817   : > { %9261 = vmatprep.subr.mxu0 %v9885_v0 }
 0x819   : > { %9254 = vmatmul.mubr.f32.vlgmr.msra.gmra.mxu0 %v3562_v57 }
 0x81a   : > { %9263 = vmatprep.mubr.msk.f32.mxu0 %vm9886_vm0, %v9885_v0 }
 0x8bd   : > { %v3190_v4 = vpop.f32.mrf.mxu1 }
 0x8bf   : > { %v9210_v5 = vpop.f32.mrf.mxu1 }
 0x8c1   : > { %v3338_v6 = vpop.f32.mrf.mxu1 }
 0x8c3   : > { %v9220_v7 = vpop.f32.mrf.mxu1 }
 0x8c5   : > { %v3114_v8 = vpop.f32.mrf.mxu0  ;;  %v3484_v10 = vpop.f32.mrf.mxu1 }
 0x8c6   : > { %v3191_v11 = vadd.f32 %v3190_v4, %v3114_v8 }
 0x8c7   : > { %v9205_v12 = vpop.f32.mrf.mxu0  ;;  %v9230_v13 = vpop.f32.mrf.mxu1 }
 0x8c9   : > { %v3264_v14 = vpop.f32.mrf.mxu0  ;;  %v3644_v15 = vpop.f32.mrf.mxu1 }
 0x8ca   : > { %v3265_v16 = vadd.f32 %v3264_v14, %v3191_v11 }
 0x8cb   : > { %v9215_v18 = vpop.f32.mrf.mxu0  ;;  %v9240_v19 = vpop.f32.mrf.mxu1 }
 0x8cc   : > { %v3339_v20 = vadd.f32 %v3338_v6, %v3265_v16 }
 0x8cd   : > { %v3412_v21 = vpop.f32.mrf.mxu0  ;;  %v3792_v22 = vpop.f32.mrf.mxu1 }
 0x8ce   : > { %v3413_v23 = vadd.f32 %v3412_v21, %v3339_v20 }
 0x8cf   : > { %v9225_v24 = vpop.f32.mrf.mxu0  ;;  %v9250_v25 = vpop.f32.mrf.mxu1 }
 0x8d0   : > { %v10323_v26 = vadd.f32 %v3484_v10, %v3413_v23 }
 0x8d1   : > { %v3568_v27 = vpop.f32.mrf.mxu0  ;;  %v3938_v28 = vpop.f32.mrf.mxu1 }
 0x8d2   : > { %v3645_v31 = vadd.f32 %v3644_v15, %v3568_v27 }
 0x8d3   : > { %v9235_v29 = vpop.f32.mrf.mxu0  ;;  %v9260_v30 = vpop.f32.mrf.mxu1 }
 0x8d5   : > { %v3718_v32 = vpop.f32.mrf.mxu0 }
 0x8d6   : > { %v3719_v33 = vadd.f32 %v3718_v32, %v3645_v31 }
 0x8d7   : > { %v9245_v34 = vpop.f32.mrf.mxu0 }
 0x8d8   : > { %v3793_v35 = vadd.f32 %v3792_v22, %v3719_v33 }
 0x8d9   : > { %v3866_v36 = vpop.f32.mrf.mxu0 }
 0x8da   : > { %v3867_v37 = vadd.f32 %v3866_v36, %v3793_v35 }
 0x8db   : > { %v9255_v38 = vpop.f32.mrf.mxu0 }
 0x8dc   : > { %v3939_v39 = vadd.f32 %v3938_v28, %v3867_v37 }
 0x8de   : > { %v3942_v40 = vsel %vm1190_vm3, %v3939_v39, -inf }
 0x8df   : > { %3943 = vmax.xlane.f32.xlu1 %v3942_v40 }
 0x968   : > { %v3944_v41 = vpop.xlane.xlu1 %3943 }
 0x969   : > { %v3945_v42 = vsub.f32 %v3939_v39, %v3944_v41 }
 0x96b   : > { %v3946_v43 = vmul.f32 1.442695, %v3945_v42 }
 0x96d   : > { %9710 = vpow2.f32 %v3946_v43 }
 0x97a   : > { %v9711_v44 = vpop.eup %9710 }
 0x97b   : > { %v3948_v45 = vsel %vm1190_vm3, %v9711_v44, 0.0 }
 0x97c   : > { %3949 = vadd.xlane.f32.xlu0 %v3948_v45 }
 0x992   : > { %3953 = vrot.lane.b32.xlu0 %v10148_v47, %s9897_s24  ;;  %s9912_s24 = smov 8  }
 0x996   : > { %4407 = vrot.lane.b32.xlu0 %v10148_v47, %s9898_s27  ;;  %s9913_s27 = smov 16  }
 0x99a   : > { %4405 = vrot.lane.b32.xlu0 %v10148_v47, %s9899_s28  ;;  %s9914_s28 = smov 20  }
 0xa05   : > { %v3950_v46 = vpop.xlane.xlu0 %3949 }
 0xa06   : > { %9712 = vrcp.f32 %v3950_v46 }
 0xa09   : > { %v3954_v48 = vpop.permute.xlu0 %3953 }
 0xa0a   : > { %v3990_v49 = vand.u32 4294901760, %v3954_v48 }
 0xa0c   : > { %v4067_v50 = vsub.f32 %v3954_v48, %v3990_v49  ;;  %9262 = vmatpush3.msra.mxu0 %v3990_v49 }
 0xa0d   : > { %v4408_v51 = vpop.permute.xlu0 %4407  ;;  %9271 = vmatprep.subr.mxu0 %v9885_v0 }
 0xa0e   : > { %v4068_v52 = vand.u32 4294901760, %v4067_v50  ;;  %v4411_v53 = vsel %vm739_vm2, %v4408_v51, 0 }
 0xa0f   : > { %v4444_v55 = vand.u32 4294901760, %v4411_v53 }
 0xa10   : > { %v4069_v54 = vsub.f32 %v4067_v50, %v4068_v52 }
 0xa11   : > { %v4521_v58 = vsub.f32 %v4411_v53, %v4444_v55  ;;  %v4406_v60 = vpop.permute.xlu0 %4405 }
 0xa12   : > { %v4070_v56 = vand.u32 4294901760, %v4069_v54  ;;  %v4409_v1 = vsel %vm739_vm2, %v4406_v60, 0 }
 0xa13   : > { %v9713_v57 = vpop.eup %9712  ;;  %v4522_v63 = vand.u32 4294901760, %v4521_v58  ;;  %v4479_v3 = vand.u32 4294901760, %v4409_v1 }
 0xa14   : > { %9267 = vmatpush3.msra.mxu1 %v4070_v56  ;;  %v3952_v59 = vmul.f32 %v9713_v57, %v9711_v44 }
 0xa15   : > { %9276 = vmatprep.subr.mxu1 %v9885_v0  ;;  %v4523_v5 = vsub.f32 %v4521_v58, %v4522_v63  ;;  %v4480_v7 = vsub.f32 %v4409_v1, %v4479_v3 }
 0xa16   : > { %v3957_v61 = vsel %vm1190_vm3, %v3952_v59, 0 }
 0xa17   : > { %v4025_v62 = vand.u32 4294901760, %v3957_v61  ;;  %v4524_v10 = vand.u32 4294901760, %v4523_v5  ;;  %v4481_v11 = vand.u32 4294901760, %v4480_v7 }
 0xa19   : > { %v4026_v2 = vsub.f32 %v3957_v61, %v4025_v62  ;;  %9269 = vmatmul.mubr.f32.vlgmr.msra.gmra.mxu1 %v4025_v62  ;;  %v4482_v12 = vsub.f32 %v4480_v7, %v4481_v11 }
 0xa1a   : > { %9277 = vmatpush3.msra.mxu1 %v3990_v49  ;;  %9278 = vmatprep.mubr.msk.f32.mxu1 %vm9886_vm0, %v9885_v0 }
 0xa1b   : > { %9286 = vmatprep.subr.mxu1 %v9885_v0  ;;  %v4027_v4 = vand.u32 4294901760, %v4026_v2  ;;  %v4483_v13 = vand.u32 4294901760, %v4482_v12 }
 0xa1d   : > { %9279 = vmatmul.mubr.f32.vlgmr.msra.gmra.mxu1 %v4027_v4  ;;  %v4028_v6 = vsub.f32 %v4026_v2, %v4027_v4 }
 0xa1e   : > { %9287 = vmatpush3.msra.mxu1 %v3990_v49  ;;  %9288 = vmatprep.mubr.msk.f32.mxu1 %vm9886_vm0, %v9885_v0 }
 0xa1f   : > { %9296 = vmatprep.subr.mxu1 %v9885_v0  ;;  %v4029_v8 = vand.u32 4294901760, %v4028_v6 }
 0xa21   : > { %9264 = vmatmul.mubr.f32.vlgmr.msra.gmra.mxu0 %v4029_v8  ;;  %9289 = vmatmul.mubr.f32.vlgmr.msra.gmra.mxu1 %v4025_v62 }
 0xa22   : > { %9272 = vmatpush3.msra.mxu0 %v4067_v50  ;;  %9297 = vmatpush3.xpose.msra.mxu1 %v4524_v10 }
 0xa23   : > { %9273 = vmatprep.mubr.msk.f32.mxu0 %vm9886_vm0, %v9885_v0  ;;  %9281 = vmatprep.subr.mxu0 %v9885_v0 }
 0xa24   : > { %9298 = vmatprep.mubr.msk.f32.mxu1 %vm9886_vm0, %v9885_v0  ;;  %9306 = vmatprep.subr.mxu1 %v9885_v0 }
 0xa25   : > { %9274 = vmatmul.mubr.f32.vlgmr.msra.gmra.mxu0 %v4026_v2  ;;  %9299 = vmatmul.mubr.f32.vlgmr.msra.gmra.mxu1 %v4479_v3 }
 0xa26   : > { %9282 = vmatpush3.msra.mxu0 %v4068_v52  ;;  %9307 = vmatpush3.xpose.msra.mxu1 %v4444_v55 }
 0xa27   : > { %9283 = vmatprep.mubr.msk.f32.mxu0 %vm9886_vm0, %v9885_v0  ;;  %9291 = vmatprep.subr.mxu0 %v9885_v0 }
 0xa28   : > { %9308 = vmatprep.mubr.msk.f32.mxu1 %vm9886_vm0, %v9885_v0  ;;  %9316 = vmatprep.subr.mxu1 %v9885_v0 }
 0xa29   : > { %9284 = vmatmul.mubr.f32.vlgmr.msra.gmra.mxu0 %v4025_v62  ;;  %9309 = vmatmul.mubr.f32.vlgmr.msra.gmra.mxu1 %v4481_v11 }
 0xa2a   : > { %9292 = vmatpush3.xpose.msra.mxu0 %v4444_v55  ;;  %9317 = vmatpush3.xpose.msra.mxu1 %v4444_v55 }
 0xa2b   : > { %9293 = vmatprep.mubr.msk.f32.mxu0 %vm9886_vm0, %v9885_v0  ;;  %9301 = vmatprep.subr.mxu0 %v9885_v0 }
 0xa2c   : > { %9318 = vmatprep.mubr.msk.f32.mxu1 %vm9886_vm0, %v9885_v0  ;;  %9326 = vmatprep.subr.mxu1 %v9885_v0 }
 0xa2d   : > { %9294 = vmatmul.mubr.f32.vlgmr.msra.gmra.mxu0 %v4483_v13  ;;  %9319 = vmatmul.mubr.f32.vlgmr.msra.gmra.mxu1 %v4479_v3 }
 0xa2e   : > { %9302 = vmatpush3.xpose.msra.mxu0 %v4521_v58  ;;  %9303 = vmatprep.mubr.msk.f32.mxu0 %vm9886_vm0, %v9885_v0 }
 0xa2f   : > { %9311 = vmatprep.subr.mxu0 %v9885_v0  ;;  %9328 = vmatprep.mubr.msk.f32.mxu1 %vm9886_vm0, %v9885_v0 }
 0xa31   : > { %9304 = vmatmul.mubr.f32.vlgmr.msra.gmra.mxu0 %v4480_v7 }
 0xa32   : > { %9312 = vmatpush3.xpose.msra.mxu0 %v4522_v63  ;;  %9313 = vmatprep.mubr.msk.f32.mxu0 %vm9886_vm0, %v9885_v0 }
 0xa33   : > { %9321 = vmatprep.subr.mxu0 %v9885_v0 }
 0xa35   : > { %9314 = vmatmul.mubr.f32.vlgmr.msra.gmra.mxu0 %v4479_v3 }
 0xa36   : > { %9323 = vmatprep.mubr.msk.f32.mxu0 %vm9886_vm0, %v9885_v0 }
 0xad9   : > { %v4107_v14 = vpop.f32.mrf.mxu1 }
 0xadb   : > { %v9270_v15 = vpop.f32.mrf.mxu1 }
 0xadd   : > { %v4255_v16 = vpop.f32.mrf.mxu1 }
 0xadf   : > { %v9280_v18 = vpop.f32.mrf.mxu1 }
 0xae1   : > { %v4031_v19 = vpop.f32.mrf.mxu0  ;;  %v4401_v20 = vpop.f32.mrf.mxu1 }
 0xae2   : > { %v4108_v21 = vadd.f32 %v4107_v14, %v4031_v19 }
 0xae3   : > { %v9265_v22 = vpop.f32.mrf.mxu0  ;;  %v9290_v23 = vpop.f32.mrf.mxu1 }
 0xae5   : > { %v4181_v24 = vpop.f32.mrf.mxu0  ;;  %v4561_v25 = vpop.f32.mrf.mxu1 }
 0xae6   : > { %v4182_v27 = vadd.f32 %v4181_v24, %v4108_v21 }
 0xae7   : > { %v9275_v28 = vpop.f32.mrf.mxu0  ;;  %v9300_v29 = vpop.f32.mrf.mxu1 }
 0xae8   : > { %v4256_v30 = vadd.f32 %v4255_v16, %v4182_v27 }
 0xae9   : > { %v4329_v31 = vpop.f32.mrf.mxu0  ;;  %v4709_v32 = vpop.f32.mrf.mxu1 }
 0xaea   : > { %v4330_v33 = vadd.f32 %v4329_v31, %v4256_v30 }
 0xaeb   : > { %v9285_v34 = vpop.f32.mrf.mxu0  ;;  %v9310_v35 = vpop.f32.mrf.mxu1 }
 0xaec   : > { %v10369_v36 = vadd.f32 %v4401_v20, %v4330_v33 }
 0xaed   : > { %v4485_v37 = vpop.f32.mrf.mxu0  ;;  %v4855_v38 = vpop.f32.mrf.mxu1 }
 0xaee   : > { %v4562_v41 = vadd.f32 %v4561_v25, %v4485_v37 }
 0xaef   : > { %v9295_v39 = vpop.f32.mrf.mxu0  ;;  %v9320_v40 = vpop.f32.mrf.mxu1 }
 0xaf1   : > { %v4635_v42 = vpop.f32.mrf.mxu0 }
 0xaf2   : > { %v4636_v43 = vadd.f32 %v4635_v42, %v4562_v41 }
 0xaf3   : > { %v9305_v44 = vpop.f32.mrf.mxu0 }
 0xaf4   : > { %v4710_v45 = vadd.f32 %v4709_v32, %v4636_v43 }
 0xaf5   : > { %v4783_v46 = vpop.f32.mrf.mxu0 }
 0xaf6   : > { %v4784_v48 = vadd.f32 %v4783_v46, %v4710_v45 }
 0xaf7   : > { %v9315_v49 = vpop.f32.mrf.mxu0 }
 0xaf8   : > { %v4856_v50 = vadd.f32 %v4855_v38, %v4784_v48 }
 0xafa   : > { %v4859_v51 = vsel %vm1190_vm3, %v4856_v50, -inf }
 0xafb   : > { %4860 = vmax.xlane.f32.xlu1 %v4859_v51 }
 0xb0c   : > { %4870 = vrot.lane.b32.xlu1 %v10148_v47, %s9900_s9  ;;  %s9915_s9 = smov 24  }
 0xb10   : > { %5324 = vrot.lane.b32.xlu1 %v10148_v47, %s9901_s10  ;;  %s9916_s10 = smov 28  }
 0xb14   : > { %5322 = vrot.lane.b32.xlu1 %v10148_v47, %s9902_s21 }
 0xb84   : > { %v4861_v52 = vpop.xlane.xlu1 %4860 }
 0xb85   : > { %v4862_v53 = vsub.f32 %v4856_v50, %v4861_v52 }
 0xb87   : > { %v4863_v54 = vmul.f32 1.442695, %v4862_v53 }
 0xb88   : > { %v4871_v55 = vpop.permute.xlu1 %4870 }
 0xb89   : > { %9714 = vpow2.f32 %v4863_v54  ;;  %v4907_v56 = vand.u32 4294901760, %v4871_v55 }
 0xb8b   : > { %v4984_v57 = vsub.f32 %v4871_v55, %v4907_v56  ;;  %9322 = vmatpush3.msra.mxu0 %v4907_v56 }
 0xb8c   : > { %9331 = vmatprep.subr.mxu0 %v9885_v0  ;;  %v5325_v1 = vpop.permute.xlu1 %5324 }
 0xb8d   : > { %v4985_v58 = vand.u32 4294901760, %v4984_v57  ;;  %v5328_v2 = vsel %vm739_vm2, %v5325_v1, 0 }
 0xb8e   : > { %v5361_v3 = vand.u32 4294901760, %v5328_v2 }
 0xb8f   : > { %v4986_v59 = vsub.f32 %v4984_v57, %v4985_v58 }
 0xb90   : > { %v5438_v5 = vsub.f32 %v5328_v2, %v5361_v3  ;;  %v5323_v7 = vpop.permute.xlu1 %5322 }
 0xb91   : > { %v4987_v60 = vand.u32 4294901760, %v4986_v59  ;;  %v5326_v12 = vsel %vm739_vm2, %v5323_v7, 0 }
 0xb92   : > { %v5439_v11 = vand.u32 4294901760, %v5438_v5  ;;  %v5396_v14 = vand.u32 4294901760, %v5326_v12 }
 0xb93   : > { %9327 = vmatpush3.msra.mxu1 %v4987_v60 }
 0xb94   : > { %9336 = vmatprep.subr.mxu1 %v9885_v0  ;;  %v5440_v16 = vsub.f32 %v5438_v5, %v5439_v11  ;;  %v5397_v19 = vsub.f32 %v5326_v12, %v5396_v14 }
 0xb96   : > { %v9715_v61 = vpop.eup %9714  ;;  %v5441_v21 = vand.u32 4294901760, %v5440_v16  ;;  %v5398_v22 = vand.u32 4294901760, %v5397_v19 }
 0xb97   : > { %v4865_v62 = vsel %vm1190_vm3, %v9715_v61, 0.0 }
 0xb98   : > { %4866 = vadd.xlane.f32.xlu0 %v4865_v62  ;;  %v5399_v23 = vsub.f32 %v5397_v19, %v5398_v22 }
 0xb9a   : > { %v5400_v24 = vand.u32 4294901760, %v5399_v23 }
 0xc21   : > { %v4867_v63 = vpop.xlane.xlu0 %4866 }
 0xc22   : > { %9716 = vrcp.f32 %v4867_v63 }
 0xc2f   : > { %v9717_v4 = vpop.eup %9716 }
 0xc30   : > { %v4869_v6 = vmul.f32 %v9717_v4, %v9715_v61 }
 0xc32   : > { %v4874_v8 = vsel %vm1190_vm3, %v4869_v6, 0 }
 0xc33   : > { %v4942_v10 = vand.u32 4294901760, %v4874_v8 }
 0xc35   : > { %v4943_v13 = vsub.f32 %v4874_v8, %v4942_v10  ;;  %9329 = vmatmul.mubr.f32.vlgmr.msra.gmra.mxu1 %v4942_v10 }
 0xc36   : > { %9337 = vmatpush3.msra.mxu1 %v4907_v56  ;;  %9338 = vmatprep.mubr.msk.f32.mxu1 %vm9886_vm0, %v9885_v0 }
 0xc37   : > { %9346 = vmatprep.subr.mxu1 %v9885_v0  ;;  %v4944_v15 = vand.u32 4294901760, %v4943_v13 }
 0xc39   : > { %9339 = vmatmul.mubr.f32.vlgmr.msra.gmra.mxu1 %v4944_v15  ;;  %v4945_v18 = vsub.f32 %v4943_v13, %v4944_v15 }
 0xc3a   : > { %9347 = vmatpush3.msra.mxu1 %v4907_v56  ;;  %9348 = vmatprep.mubr.msk.f32.mxu1 %vm9886_vm0, %v9885_v0 }
 0xc3b   : > { %9356 = vmatprep.subr.mxu1 %v9885_v0  ;;  %v4946_v20 = vand.u32 4294901760, %v4945_v18 }
 0xc3d   : > { %9324 = vmatmul.mubr.f32.vlgmr.msra.gmra.mxu0 %v4946_v20  ;;  %9349 = vmatmul.mubr.f32.vlgmr.msra.gmra.mxu1 %v4942_v10 }
 0xc3e   : > { %9332 = vmatpush3.msra.mxu0 %v4984_v57  ;;  %9357 = vmatpush3.xpose.msra.mxu1 %v5441_v21 }
 0xc3f   : > { %9333 = vmatprep.mubr.msk.f32.mxu0 %vm9886_vm0, %v9885_v0  ;;  %9341 = vmatprep.subr.mxu0 %v9885_v0 }
 0xc40   : > { %9358 = vmatprep.mubr.msk.f32.mxu1 %vm9886_vm0, %v9885_v0  ;;  %9366 = vmatprep.subr.mxu1 %v9885_v0 }
 0xc41   : > { %9334 = vmatmul.mubr.f32.vlgmr.msra.gmra.mxu0 %v4943_v13  ;;  %9359 = vmatmul.mubr.f32.vlgmr.msra.gmra.mxu1 %v5396_v14 }
 0xc42   : > { %9342 = vmatpush3.msra.mxu0 %v4985_v58  ;;  %9367 = vmatpush3.xpose.msra.mxu1 %v5361_v3 }
 0xc43   : > { %9343 = vmatprep.mubr.msk.f32.mxu0 %vm9886_vm0, %v9885_v0  ;;  %9351 = vmatprep.subr.mxu0 %v9885_v0 }
 0xc44   : > { %9368 = vmatprep.mubr.msk.f32.mxu1 %vm9886_vm0, %v9885_v0  ;;  %9376 = vmatprep.subr.mxu1 %v9885_v0 }
 0xc45   : > { %9344 = vmatmul.mubr.f32.vlgmr.msra.gmra.mxu0 %v4942_v10  ;;  %9369 = vmatmul.mubr.f32.vlgmr.msra.gmra.mxu1 %v5398_v22 }
 0xc46   : > { %9352 = vmatpush3.xpose.msra.mxu0 %v5361_v3  ;;  %9377 = vmatpush3.xpose.msra.mxu1 %v5361_v3 }
 0xc47   : > { %9353 = vmatprep.mubr.msk.f32.mxu0 %vm9886_vm0, %v9885_v0  ;;  %9361 = vmatprep.subr.mxu0 %v9885_v0 }
 0xc48   : > { %9378 = vmatprep.mubr.msk.f32.mxu1 %vm9886_vm0, %v9885_v0  ;;  %9386 = vmatprep.subr.mxu1 %v9885_v0 }
 0xc49   : > { %9354 = vmatmul.mubr.f32.vlgmr.msra.gmra.mxu0 %v5400_v24  ;;  %9379 = vmatmul.mubr.f32.vlgmr.msra.gmra.mxu1 %v5396_v14 }
 0xc4a   : > { %9362 = vmatpush3.xpose.msra.mxu0 %v5438_v5  ;;  %9363 = vmatprep.mubr.msk.f32.mxu0 %vm9886_vm0, %v9885_v0 }
 0xc4b   : > { %9371 = vmatprep.subr.mxu0 %v9885_v0  ;;  %9388 = vmatprep.mubr.msk.f32.mxu1 %vm9886_vm0, %v9885_v0 }
 0xc4d   : > { %9364 = vmatmul.mubr.f32.vlgmr.msra.gmra.mxu0 %v5397_v19 }
 0xc4e   : > { %9372 = vmatpush3.xpose.msra.mxu0 %v5439_v11  ;;  %9373 = vmatprep.mubr.msk.f32.mxu0 %vm9886_vm0, %v9885_v0 }
 0xc4f   : > { %9381 = vmatprep.subr.mxu0 %v9885_v0 }
 0xc51   : > { %9374 = vmatmul.mubr.f32.vlgmr.msra.gmra.mxu0 %v5396_v14 }
 0xc52   : > { %9383 = vmatprep.mubr.msk.f32.mxu0 %vm9886_vm0, %v9885_v0 }
 0xcf5   : > { %v5024_v25 = vpop.f32.mrf.mxu1 }
 0xcf7   : > { %v9330_v27 = vpop.f32.mrf.mxu1 }
 0xcf9   : > { %v5172_v28 = vpop.f32.mrf.mxu1 }
 0xcfb   : > { %v9340_v29 = vpop.f32.mrf.mxu1 }
 0xcfd   : > { %v4948_v30 = vpop.f32.mrf.mxu0  ;;  %v5318_v31 = vpop.f32.mrf.mxu1 }
 0xcfe   : > { %v5025_v32 = vadd.f32 %v5024_v25, %v4948_v30 }
 0xcff   : > { %v9325_v33 = vpop.f32.mrf.mxu0  ;;  %v9350_v34 = vpop.f32.mrf.mxu1 }
 0xd01   : > { %v5098_v35 = vpop.f32.mrf.mxu0  ;;  %v5478_v37 = vpop.f32.mrf.mxu1 }
 0xd02   : > { %v5099_v38 = vadd.f32 %v5098_v35, %v5025_v32 }
 0xd03   : > { %v9335_v39 = vpop.f32.mrf.mxu0  ;;  %v9360_v40 = vpop.f32.mrf.mxu1 }
 0xd04   : > { %v5173_v41 = vadd.f32 %v5172_v28, %v5099_v38 }
 0xd05   : > { %v5246_v42 = vpop.f32.mrf.mxu0  ;;  %v5626_v43 = vpop.f32.mrf.mxu1 }
 0xd06   : > { %v5247_v44 = vadd.f32 %v5246_v42, %v5173_v41 }
 0xd07   : > { %v9345_v45 = vpop.f32.mrf.mxu0  ;;  %v9370_v46 = vpop.f32.mrf.mxu1 }
 0xd08   : > { %v10415_v48 = vadd.f32 %v5318_v31, %v5247_v44 }
 0xd09   : > { %v5402_v49 = vpop.f32.mrf.mxu0  ;;  %v5772_v50 = vpop.f32.mrf.mxu1 }
 0xd0a   : > { %v5479_v53 = vadd.f32 %v5478_v37, %v5402_v49 }
 0xd0b   : > { %v9355_v51 = vpop.f32.mrf.mxu0  ;;  %v9380_v52 = vpop.f32.mrf.mxu1 }
 0xd0d   : > { %v5552_v54 = vpop.f32.mrf.mxu0 }
 0xd0e   : > { %v5553_v55 = vadd.f32 %v5552_v54, %v5479_v53 }
 0xd0f   : > { %v9365_v56 = vpop.f32.mrf.mxu0 }
 0xd10   : > { %v5627_v57 = vadd.f32 %v5626_v43, %v5553_v55 }
 0xd11   : > { %v5700_v58 = vpop.f32.mrf.mxu0 }
 0xd12   : > { %v5701_v59 = vadd.f32 %v5700_v58, %v5627_v57 }
 0xd13   : > { %v9375_v60 = vpop.f32.mrf.mxu0 }
 0xd14   : > { %v5773_v61 = vadd.f32 %v5772_v50, %v5701_v59 }
 0xd16   : > { %v5776_v62 = vsel %vm1190_vm3, %v5773_v61, -inf }
 0xd17   : > { %5777 = vmax.xlane.f32.xlu1 %v5776_v62 }
 0xda0   : > { %v5778_v63 = vpop.xlane.xlu1 %5777 }
 0xda1   : > { %v5779_v1 = vsub.f32 %v5773_v61, %v5778_v63 }
 0xda3   : > { %v5780_v2 = vmul.f32 1.442695, %v5779_v1 }
 0xda5   : > { %9718 = vpow2.f32 %v5780_v2 }
 0xdb2   : > { %v9719_v3 = vpop.eup %9718 }
 0xdb3   : > { %v5782_v4 = vsel %vm1190_vm3, %v9719_v3, 0.0 }
 0xdb4   : > { %5783 = vadd.xlane.f32.xlu0 %v5782_v4 }
 0xdca   : > { %5787 = vrot.lane.b32.xlu0 %v10148_v47, %s9903_s23 }
 0xdce   : > { %6241 = vrot.lane.b32.xlu0 %v10148_v47, %s9904_s29  ;;  %s8730_s29 = sshll.u32 %s9964_s19, 7  ;;  %s9917_s19 = smov [#allocation8]  }
 0xdd2   : > { %6239 = vrot.lane.b32.xlu0 %v10148_v47, %s9905_s5  ;;  %s241_s5 = scalar_lea.vmem [#allocation8], %s8724_s8 }
 0xe3d   : > { %v5784_v5 = vpop.xlane.xlu0 %5783 }
 0xe3e   : > { %9720 = vrcp.f32 %v5784_v5 }
 0xe41   : > { %v5788_v6 = vpop.permute.xlu0 %5787 }
 0xe42   : > { %v5824_v7 = vand.u32 4294901760, %v5788_v6 }
 0xe44   : > { %v5901_v8 = vsub.f32 %v5788_v6, %v5824_v7  ;;  %9382 = vmatpush3.msra.mxu0 %v5824_v7 }
 0xe45   : > { %v6242_v10 = vpop.permute.xlu0 %6241  ;;  %9391 = vmatprep.subr.mxu0 %v9885_v0 }
 0xe46   : > { %v5902_v11 = vand.u32 4294901760, %v5901_v8  ;;  %v6245_v12 = vsel %vm739_vm2, %v6242_v10, 0 }
 0xe47   : > { %v6278_v14 = vand.u32 4294901760, %v6245_v12 }
 0xe48   : > { %v5903_v13 = vsub.f32 %v5901_v8, %v5902_v11 }
 0xe49   : > { %v6355_v18 = vsub.f32 %v6245_v12, %v6278_v14  ;;  %v6240_v20 = vpop.permute.xlu0 %6239 }
 0xe4a   : > { %v5904_v15 = vand.u32 4294901760, %v5903_v13  ;;  %v6243_v24 = vsel %vm739_vm2, %v6240_v20, 0 }
 0xe4b   : > { %v9721_v16 = vpop.eup %9720  ;;  %v6356_v23 = vand.u32 4294901760, %v6355_v18  ;;  %v6313_v27 = vand.u32 4294901760, %v6243_v24 }
 0xe4c   : > { %9387 = vmatpush3.msra.mxu1 %v5904_v15  ;;  %v5786_v19 = vmul.f32 %v9721_v16, %v9719_v3 }
 0xe4d   : > { %9396 = vmatprep.subr.mxu1 %v9885_v0  ;;  %v6357_v29 = vsub.f32 %v6355_v18, %v6356_v23  ;;  %v6314_v31 = vsub.f32 %v6243_v24, %v6313_v27 }
 0xe4e   : > { %v5791_v21 = vsel %vm1190_vm3, %v5786_v19, 0 }
 0xe4f   : > { %v5859_v22 = vand.u32 4294901760, %v5791_v21  ;;  %v6358_v33 = vand.u32 4294901760, %v6357_v29  ;;  %v6315_v34 = vand.u32 4294901760, %v6314_v31 }
 0xe51   : > { %v5860_v25 = vsub.f32 %v5791_v21, %v5859_v22  ;;  %9389 = vmatmul.mubr.f32.vlgmr.msra.gmra.mxu1 %v5859_v22  ;;  %v6316_v35 = vsub.f32 %v6314_v31, %v6315_v34 }
 0xe52   : > { %9397 = vmatpush3.msra.mxu1 %v5824_v7  ;;  %9398 = vmatprep.mubr.msk.f32.mxu1 %vm9886_vm0, %v9885_v0 }
 0xe53   : > { %9406 = vmatprep.subr.mxu1 %v9885_v0  ;;  %v5861_v28 = vand.u32 4294901760, %v5860_v25  ;;  %v6317_v37 = vand.u32 4294901760, %v6316_v35 }
 0xe55   : > { %9399 = vmatmul.mubr.f32.vlgmr.msra.gmra.mxu1 %v5861_v28  ;;  %v5862_v30 = vsub.f32 %v5860_v25, %v5861_v28 }
 0xe56   : > { %9407 = vmatpush3.msra.mxu1 %v5824_v7  ;;  %9408 = vmatprep.mubr.msk.f32.mxu1 %vm9886_vm0, %v9885_v0 }
 0xe57   : > { %9416 = vmatprep.subr.mxu1 %v9885_v0  ;;  %v5863_v32 = vand.u32 4294901760, %v5862_v30 }
 0xe59   : > { %9384 = vmatmul.mubr.f32.vlgmr.msra.gmra.mxu0 %v5863_v32  ;;  %9409 = vmatmul.mubr.f32.vlgmr.msra.gmra.mxu1 %v5859_v22 }
 0xe5a   : > { %9392 = vmatpush3.msra.mxu0 %v5901_v8  ;;  %9417 = vmatpush3.xpose.msra.mxu1 %v6358_v33 }
 0xe5b   : > { %9393 = vmatprep.mubr.msk.f32.mxu0 %vm9886_vm0, %v9885_v0  ;;  %9401 = vmatprep.subr.mxu0 %v9885_v0 }
 0xe5c   : > { %9418 = vmatprep.mubr.msk.f32.mxu1 %vm9886_vm0, %v9885_v0  ;;  %9426 = vmatprep.subr.mxu1 %v9885_v0 }
 0xe5d   : > { %9394 = vmatmul.mubr.f32.vlgmr.msra.gmra.mxu0 %v5860_v25  ;;  %9419 = vmatmul.mubr.f32.vlgmr.msra.gmra.mxu1 %v6313_v27 }
 0xe5e   : > { %9402 = vmatpush3.msra.mxu0 %v5902_v11  ;;  %9427 = vmatpush3.xpose.msra.mxu1 %v6278_v14 }
 0xe5f   : > { %9403 = vmatprep.mubr.msk.f32.mxu0 %vm9886_vm0, %v9885_v0  ;;  %9411 = vmatprep.subr.mxu0 %v9885_v0 }
 0xe60   : > { %9428 = vmatprep.mubr.msk.f32.mxu1 %vm9886_vm0, %v9885_v0  ;;  %9436 = vmatprep.subr.mxu1 %v9885_v0 }
 0xe61   : > { %9404 = vmatmul.mubr.f32.vlgmr.msra.gmra.mxu0 %v5859_v22  ;;  %9429 = vmatmul.mubr.f32.vlgmr.msra.gmra.mxu1 %v6315_v34 }
 0xe62   : > { %9412 = vmatpush3.xpose.msra.mxu0 %v6278_v14  ;;  %9437 = vmatpush3.xpose.msra.mxu1 %v6278_v14 }
 0xe63   : > { %9413 = vmatprep.mubr.msk.f32.mxu0 %vm9886_vm0, %v9885_v0  ;;  %9421 = vmatprep.subr.mxu0 %v9885_v0 }
 0xe64   : > { %9438 = vmatprep.mubr.msk.f32.mxu1 %vm9886_vm0, %v9885_v0  ;;  %9446 = vmatprep.subr.mxu1 %v9885_v0 }
 0xe65   : > { %9414 = vmatmul.mubr.f32.vlgmr.msra.gmra.mxu0 %v6317_v37  ;;  %9439 = vmatmul.mubr.f32.vlgmr.msra.gmra.mxu1 %v6313_v27 }
 0xe66   : > { %9422 = vmatpush3.xpose.msra.mxu0 %v6355_v18  ;;  %9423 = vmatprep.mubr.msk.f32.mxu0 %vm9886_vm0, %v9885_v0 }
 0xe67   : > { %9431 = vmatprep.subr.mxu0 %v9885_v0  ;;  %9448 = vmatprep.mubr.msk.f32.mxu1 %vm9886_vm0, %v9885_v0 }
 0xe69   : > { %9424 = vmatmul.mubr.f32.vlgmr.msra.gmra.mxu0 %v6314_v31 }
 0xe6a   : > { %9432 = vmatpush3.xpose.msra.mxu0 %v6356_v23  ;;  %9433 = vmatprep.mubr.msk.f32.mxu0 %vm9886_vm0, %v9885_v0 }
 0xe6b   : > { %9441 = vmatprep.subr.mxu0 %v9885_v0 }
 0xe6d   : > { %9434 = vmatmul.mubr.f32.vlgmr.msra.gmra.mxu0 %v6313_v27 }
 0xe6e   : > { %9443 = vmatprep.mubr.msk.f32.mxu0 %vm9886_vm0, %v9885_v0 }
 0xf11   : > { %v5941_v38 = vpop.f32.mrf.mxu1 }
 0xf13   : > { %v9390_v39 = vpop.f32.mrf.mxu1 }
 0xf15   : > { %v6089_v40 = vpop.f32.mrf.mxu1 }
 0xf17   : > { %v9400_v41 = vpop.f32.mrf.mxu1 }
 0xf19   : > { %v5865_v42 = vpop.f32.mrf.mxu0  ;;  %v6235_v43 = vpop.f32.mrf.mxu1 }
 0xf1a   : > { %v5942_v44 = vadd.f32 %v5941_v38, %v5865_v42 }
 0xf1b   : > { %v9385_v45 = vpop.f32.mrf.mxu0  ;;  %v9410_v46 = vpop.f32.mrf.mxu1 }
 0xf1d   : > { %v6015_v49 = vpop.f32.mrf.mxu0  ;;  %v6395_v50 = vpop.f32.mrf.mxu1 }
 0xf1e   : > { %v6016_v51 = vadd.f32 %v6015_v49, %v5942_v44 }
 0xf1f   : > { %v9395_v52 = vpop.f32.mrf.mxu0  ;;  %v9420_v53 = vpop.f32.mrf.mxu1 }
 0xf20   : > { %v6090_v54 = vadd.f32 %v6089_v40, %v6016_v51 }
 0xf21   : > { %v6163_v55 = vpop.f32.mrf.mxu0  ;;  %v6543_v56 = vpop.f32.mrf.mxu1 }
 0xf22   : > { %v6164_v57 = vadd.f32 %v6163_v55, %v6090_v54 }
 0xf23   : > { %v9405_v58 = vpop.f32.mrf.mxu0  ;;  %v9430_v59 = vpop.f32.mrf.mxu1 }
 0xf24   : > { %v10461_v60 = vadd.f32 %v6235_v43, %v6164_v57 }
 0xf25   : > { %v6319_v61 = vpop.f32.mrf.mxu0  ;;  %v6689_v62 = vpop.f32.mrf.mxu1 }
 0xf26   : > { %v6396_v2 = vadd.f32 %v6395_v50, %v6319_v61 }
 0xf27   : > { %v9415_v63 = vpop.f32.mrf.mxu0  ;;  %v9440_v1 = vpop.f32.mrf.mxu1 }
 0xf29   : > { %v6469_v3 = vpop.f32.mrf.mxu0 }
 0xf2a   : > { %v6470_v4 = vadd.f32 %v6469_v3, %v6396_v2 }
 0xf2b   : > { %v9425_v5 = vpop.f32.mrf.mxu0 }
 0xf2c   : > { %v6544_v6 = vadd.f32 %v6543_v56, %v6470_v4 }
 0xf2d   : > { %v6617_v7 = vpop.f32.mrf.mxu0 }
 0xf2e   : > { %v6618_v8 = vadd.f32 %v6617_v7, %v6544_v6 }
 0xf2f   : > { %v9435_v10 = vpop.f32.mrf.mxu0 }
 0xf30   : > { %v6690_v11 = vadd.f32 %v6689_v62, %v6618_v8 }
 0xf32   : > { %v6693_v12 = vsel %vm1190_vm3, %v6690_v11, -inf }
 0xf33   : > { %6694 = vmax.xlane.f32.xlu1 %v6693_v12 }
 0xf44   : > { %6704 = vrot.lane.b32.xlu1 %v10148_v47, %s9906_s6  ;;  %s8627_s6 = sshll.u32 %s241_s5, 4  ;;  %s8628_s6 = int_to_ptr.vmem [resolvable:$true] %s8627_s6 }
 0xf48   : > { %7158 = vrot.lane.b32.xlu1 %v10148_v47, %s9907_s7 }
 0xf4c   : > { %7156 = vrot.lane.b32.xlu1 %v10148_v47, %s9908_s12 }
 0xfbc   : > { %v6695_v13 = vpop.xlane.xlu1 %6694 }
 0xfbd   : > { %v6696_v14 = vsub.f32 %v6690_v11, %v6695_v13 }
 0xfbf   : > { %v6697_v15 = vmul.f32 1.442695, %v6696_v14 }
 0xfc0   : > { %v6705_v16 = vpop.permute.xlu1 %6704 }
 0xfc1   : > { %9722 = vpow2.f32 %v6697_v15  ;;  %v6741_v18 = vand.u32 4294901760, %v6705_v16 }
 0xfc3   : > { %v6818_v19 = vsub.f32 %v6705_v16, %v6741_v18  ;;  %9442 = vmatpush3.msra.mxu0 %v6741_v18 }
 0xfc4   : > { %9451 = vmatprep.subr.mxu0 %v9885_v0  ;;  %v7159_v27 = vpop.permute.xlu1 %7158 }
 0xfc5   : > { %v6819_v20 = vand.u32 4294901760, %v6818_v19  ;;  %v7162_v28 = vsel %vm739_vm2, %v7159_v27, 0 }
 0xfc6   : > { %v7195_v29 = vand.u32 4294901760, %v7162_v28 }
 0xfc7   : > { %v6820_v21 = vsub.f32 %v6818_v19, %v6819_v20 }
 0xfc8   : > { %v7272_v31 = vsub.f32 %v7162_v28, %v7195_v29  ;;  %v7157_v33 = vpop.permute.xlu1 %7156 }
 0xfc9   : > { %v6821_v22 = vand.u32 4294901760, %v6820_v21  ;;  %v7160_v38 = vsel %vm739_vm2, %v7157_v33, 0 }
 0xfca   : > { %v7273_v37 = vand.u32 4294901760, %v7272_v31  ;;  %v7230_v40 = vand.u32 4294901760, %v7160_v38 }
 0xfcb   : > { %9447 = vmatpush3.msra.mxu1 %v6821_v22 }
 0xfcc   : > { %9456 = vmatprep.subr.mxu1 %v9885_v0  ;;  %v7274_v42 = vsub.f32 %v7272_v31, %v7273_v37  ;;  %v7231_v44 = vsub.f32 %v7160_v38, %v7230_v40 }
 0xfce   : > { %v9723_v23 = vpop.eup %9722  ;;  %v7275_v46 = vand.u32 4294901760, %v7274_v42  ;;  %v7232_v49 = vand.u32 4294901760, %v7231_v44 }
 0xfcf   : > { %v6699_v24 = vsel %vm1190_vm3, %v9723_v23, 0.0 }
 0xfd0   : > { %6700 = vadd.xlane.f32.xlu0 %v6699_v24  ;;  %v7233_v50 = vsub.f32 %v7231_v44, %v7232_v49 }
 0xfd2   : > { %v7234_v51 = vand.u32 4294901760, %v7233_v50 }
0x1059   : > { %v6701_v25 = vpop.xlane.xlu0 %6700 }
0x105a   : > { %9724 = vrcp.f32 %v6701_v25 }
0x1067   : > { %v9725_v30 = vpop.eup %9724 }
0x1068   : > { %v6703_v32 = vmul.f32 %v9725_v30, %v9723_v23 }
0x106a   : > { %v6708_v34 = vsel %vm1190_vm3, %v6703_v32, 0 }
0x106b   : > { %v6776_v35 = vand.u32 4294901760, %v6708_v34 }
0x106d   : > { %v6777_v39 = vsub.f32 %v6708_v34, %v6776_v35  ;;  %9449 = vmatmul.mubr.f32.vlgmr.msra.gmra.mxu1 %v6776_v35 }
0x106e   : > { %9457 = vmatpush3.msra.mxu1 %v6741_v18  ;;  %9458 = vmatprep.mubr.msk.f32.mxu1 %vm9886_vm0, %v9885_v0 }
0x106f   : > { %9466 = vmatprep.subr.mxu1 %v9885_v0  ;;  %v6778_v41 = vand.u32 4294901760, %v6777_v39 }
0x1071   : > { %9459 = vmatmul.mubr.f32.vlgmr.msra.gmra.mxu1 %v6778_v41  ;;  %v6779_v43 = vsub.f32 %v6777_v39, %v6778_v41 }
0x1072   : > { %9467 = vmatpush3.msra.mxu1 %v6741_v18  ;;  %9468 = vmatprep.mubr.msk.f32.mxu1 %vm9886_vm0, %v9885_v0 }
0x1073   : > { %9476 = vmatprep.subr.mxu1 %v9885_v0  ;;  %v6780_v45 = vand.u32 4294901760, %v6779_v43  ;;  %v8116_v43 = vld [vmem:[#allocation7 + $0x18] sm:$0xff] }
0x1075   : > { %9444 = vmatmul.mubr.f32.vlgmr.msra.gmra.mxu0 %v6780_v45  ;;  %9469 = vmatmul.mubr.f32.vlgmr.msra.gmra.mxu1 %v6776_v35  ;;  %v10534_v45 = vand.u32 4294901760, %v8116_v43 }
0x1076   : > { %9452 = vmatpush3.msra.mxu0 %v6818_v19  ;;  %9477 = vmatpush3.xpose.msra.mxu1 %v7275_v46 }
0x1077   : > { %9453 = vmatprep.mubr.msk.f32.mxu0 %vm9886_vm0, %v9885_v0  ;;  %9461 = vmatprep.subr.mxu0 %v9885_v0 }
0x1078   : > { %9478 = vmatprep.mubr.msk.f32.mxu1 %vm9886_vm0, %v9885_v0  ;;  %9486 = vmatprep.subr.mxu1 %v9885_v0 }
0x1079   : > { %9454 = vmatmul.mubr.f32.vlgmr.msra.gmra.mxu0 %v6777_v39  ;;  %9479 = vmatmul.mubr.f32.vlgmr.msra.gmra.mxu1 %v7230_v40 }
0x107a   : > { %9462 = vmatpush3.msra.mxu0 %v6819_v20  ;;  %9487 = vmatpush3.xpose.msra.mxu1 %v7195_v29 }
0x107b   : > { %9463 = vmatprep.mubr.msk.f32.mxu0 %vm9886_vm0, %v9885_v0  ;;  %9471 = vmatprep.subr.mxu0 %v9885_v0 }
0x107c   : > { %9488 = vmatprep.mubr.msk.f32.mxu1 %vm9886_vm0, %v9885_v0  ;;  %9496 = vmatprep.subr.mxu1 %v9885_v0 }
0x107d   : > { %9464 = vmatmul.mubr.f32.vlgmr.msra.gmra.mxu0 %v6776_v35  ;;  %9489 = vmatmul.mubr.f32.vlgmr.msra.gmra.mxu1 %v7232_v49  ;;  %v10539_v49 = vsub.f32 %v8116_v43, %v10534_v45 }
0x107e   : > { %9472 = vmatpush3.xpose.msra.mxu0 %v7195_v29  ;;  %9497 = vmatpush3.xpose.msra.mxu1 %v7195_v29 }
0x107f   : > { %9473 = vmatprep.mubr.msk.f32.mxu0 %vm9886_vm0, %v9885_v0  ;;  %9481 = vmatprep.subr.mxu0 %v9885_v0 }
0x1080   : > { %9498 = vmatprep.mubr.msk.f32.mxu1 %vm9886_vm0, %v9885_v0  ;;  %9506 = vmatprep.subr.mxu1 %v9885_v0 }
0x1081   : > { %9474 = vmatmul.mubr.f32.vlgmr.msra.gmra.mxu0 %v7234_v51  ;;  %9499 = vmatmul.mubr.f32.vlgmr.msra.gmra.mxu1 %v7230_v40  ;;  %v8233_v51 = vand.u32 4294901760, %v10539_v49 }
0x1082   : > { %9482 = vmatpush3.xpose.msra.mxu0 %v7272_v31  ;;  %9483 = vmatprep.mubr.msk.f32.mxu0 %vm9886_vm0, %v9885_v0 }
0x1083   : > { %9491 = vmatprep.subr.mxu0 %v9885_v0  ;;  %9508 = vmatprep.mubr.msk.f32.mxu1 %vm9886_vm0, %v9885_v0 }
0x1085   : > { %9484 = vmatmul.mubr.f32.vlgmr.msra.gmra.mxu0 %v7231_v44  ;;  %v8115_v44 = vld [vmem:[#allocation7 + $0x10] sm:$0xff] }
0x1086   : > { %9492 = vmatpush3.xpose.msra.mxu0 %v7273_v37  ;;  %9493 = vmatprep.mubr.msk.f32.mxu0 %vm9886_vm0, %v9885_v0  ;;  %v10536_v46 = vand.u32 4294901760, %v8115_v44 }
0x1087   : > { %9501 = vmatprep.subr.mxu0 %v9885_v0 }
0x1088   : > { %v10542_v50 = vsub.f32 %v8115_v44, %v10536_v46 }
0x1089   : > { %9494 = vmatmul.mubr.f32.vlgmr.msra.gmra.mxu0 %v7230_v40 }
0x108a   : > { %9503 = vmatprep.mubr.msk.f32.mxu0 %vm9886_vm0, %v9885_v0 }
0x112d   : > { %v6858_v52 = vpop.f32.mrf.mxu1 }
0x112f   : > { %v9450_v53 = vpop.f32.mrf.mxu1 }
0x1130   : > { %v8234_v53 = vsub.f32 %v10539_v49, %v8233_v51 }
0x1131   : > { %v7006_v54 = vpop.f32.mrf.mxu1 }
0x1133   : > { %v9460_v55 = vpop.f32.mrf.mxu1 }
0x1134   : > { %v8235_v55 = vand.u32 4294901760, %v8234_v53 }
0x1135   : > { %v6782_v56 = vpop.f32.mrf.mxu0  ;;  %v7152_v57 = vpop.f32.mrf.mxu1 }
0x1136   : > { %v6859_v58 = vadd.f32 %v6858_v52, %v6782_v56  ;;  %v8240_v52 = vand.u32 4294901760, %v10542_v50 }
0x1137   : > { %v9445_v59 = vpop.f32.mrf.mxu0  ;;  %v9470_v61 = vpop.f32.mrf.mxu1 }
0x1138   : > { %v8113_v61 = vld [vmem:[#allocation7] sm:$0xff] }
0x1139   : > { %v6932_v62 = vpop.f32.mrf.mxu0  ;;  %v7312_v63 = vpop.f32.mrf.mxu1 }
0x113a   : > { %v6933_v1 = vadd.f32 %v6932_v62, %v6859_v58 }
0x113b   : > { %v9455_v2 = vpop.f32.mrf.mxu0  ;;  %v9480_v3 = vpop.f32.mrf.mxu1 }
0x113c   : > { %v7007_v4 = vadd.f32 %v7006_v54, %v6933_v1  ;;  %v8241_v54 = vsub.f32 %v10542_v50, %v8240_v52 }
0x113d   : > { %v7080_v5 = vpop.f32.mrf.mxu0  ;;  %v7460_v6 = vpop.f32.mrf.mxu1 }
0x113e   : > { %v7081_v7 = vadd.f32 %v7080_v5, %v7007_v4  ;;  %v8242_v56 = vand.u32 4294901760, %v8241_v54 }
0x113f   : > { %v9465_v8 = vpop.f32.mrf.mxu0  ;;  %v9490_v10 = vpop.f32.mrf.mxu1 }
0x1140   : > { %v7153_v11 = vadd.f32 %v7152_v57, %v7081_v7  ;;  %v8114_v57 = vld [vmem:[#allocation7 + $0x8] sm:$0xff] }
0x1141   : > { %v7236_v12 = vpop.f32.mrf.mxu0  ;;  %v7606_v13 = vpop.f32.mrf.mxu1  ;;  %v10558_v58 = vand.u32 4294901760, %v8114_v57 }
0x1142   : > { %v7313_v16 = vadd.f32 %v7312_v63, %v7236_v12  ;;  %v10563_v63 = vand.u32 4294901760, %v8113_v61 }
0x1143   : > { %v9475_v14 = vpop.f32.mrf.mxu0  ;;  %v9500_v15 = vpop.f32.mrf.mxu1  ;;  %v10561_v62 = vsub.f32 %v8114_v57, %v10558_v58 }
0x1144   : > { %v10569_v3 = vsub.f32 %v8113_v61, %v10563_v63 }
0x1145   : > { %v7386_v18 = vpop.f32.mrf.mxu0  ;;  %v8247_v2 = vand.u32 4294901760, %v10561_v62 }
0x1146   : > { %v7387_v19 = vadd.f32 %v7386_v18, %v7313_v16 }
0x1147   : > { %v9485_v20 = vpop.f32.mrf.mxu0  ;;  %v8248_v5 = vsub.f32 %v10561_v62, %v8247_v2 }
0x1148   : > { %v7461_v21 = vadd.f32 %v7460_v6, %v7387_v19  ;;  %v8254_v6 = vand.u32 4294901760, %v10569_v3 }
0x1149   : > { %v7534_v22 = vpop.f32.mrf.mxu0  ;;  %v8249_v8 = vand.u32 4294901760, %v8248_v5 }
0x114a   : > { %v7535_v23 = vadd.f32 %v7534_v22, %v7461_v21  ;;  %v8255_v10 = vsub.f32 %v10569_v3, %v8254_v6 }
0x114b   : > { %v9495_v24 = vpop.f32.mrf.mxu0 }
0x114c   : > { %v7607_v25 = vadd.f32 %v7606_v13, %v7535_v23  ;;  %v8256_v13 = vand.u32 4294901760, %v8255_v10 }
0x114e   : > { %v7610_v27 = vsel %vm1190_vm3, %v7607_v25, -inf }
0x114f   : > { %7611 = vmax.xlane.f32.xlu1 %v7610_v27 }
0x1160   : > { %8082 = vrot.lane.b32.xlu1 %v10369_v36, %s9909_s13  ;;  %s8625_s13 = scalar_lea.hbm %s10673_s4, %s8730_s29 }
0x11d8   : > { %v7612_v28 = vpop.xlane.xlu1 %7611 }
0x11d9   : > { %v7613_v29 = vsub.f32 %v7607_v25, %v7612_v28 }
0x11db   : > { %v7614_v30 = vmul.f32 1.442695, %v7613_v29 }
0x11dd   : > { %9726 = vpow2.f32 %v7614_v30 }
0x11ea   : > { %v9727_v31 = vpop.eup %9726 }
0x11eb   : > { %v7616_v32 = vsel %vm1190_vm3, %v9727_v31, 0.0 }
0x11ec   : > { %7617 = vadd.xlane.f32.xlu0 %v7616_v32 }
0x1202   : > { %7621 = vrot.lane.b32.xlu0 %v10148_v47, %s9910_s25  ;;  %s8614_s25 = scalar_lea.sflag [#allocation4], %s10061_s30 }
0x1206   : > { %8074 = vrot.lane.b32.xlu0 %v10277_v17, %s9911_s26  ;;  %s9810_s26 = scalar_lea.vmem %s8628_s6, 128 }
0x1207   : > { %p9811_p11 = scmp.ne.s32.totalorder %s8628_s6, %s9810_s26 }
0x1209   : > { %p9812_p1 = pnand %p9811_p11, %p10689_p0 }
0x120a   : > { %8078 = vrot.lane.b32.xlu0 %v10323_v26, %s9912_s24  ;;  %s9814_s24 = sshll.u32 %s9917_s19, 4  ;;  %s9815_s24 = int_to_ptr.vmem [resolvable:$false] %s9814_s24 }
0x120b   : > { %p9813_p2 = pneg %p9812_p1  ;;  %s9816_s8 = scalar_lea.vmem %s9815_s24, 256 }
0x120c   : > { %p9817_p6 = scmp.lt.s32.totalorder %s8628_s6, %s9815_s24  ;;  %p9818_p12 = scmp.lt.s32.totalorder %s9816_s8, %s9810_s26 }
0x120e   : > { %8086 = vrot.lane.b32.xlu0 %v10415_v48, %s9913_s27  ;;  %p9819_p7 = por %p9818_p12, %p9817_p6 }
0x1210   : > { %p9820_p9 = pnand %p9819_p7, %p9813_p2 }
0x1212   : > { %8090 = vrot.lane.b32.xlu0 %v10461_v60, %s9914_s28 }
0x1216   : > { %8094 = vrot.lane.b32.xlu0 %v7153_v11, %s9915_s9 }
0x1275   : > { %v7618_v36 = vpop.xlane.xlu0 %7617 }
0x1276   : > { %9728 = vrcp.f32 %v7618_v36  ;;  %v8083_v36 = vpop.permute.xlu1 %8082 }
0x1279   : > { %v7622_v33 = vpop.permute.xlu0 %7621 }
0x127a   : > { %v7658_v34 = vand.u32 4294901760, %v7622_v33 }
0x127c   : > { %v7735_v35 = vsub.f32 %v7622_v33, %v7658_v34  ;;  %9502 = vmatpush3.msra.mxu0 %v7658_v34 }
0x127d   : > { %9511 = vmatprep.subr.mxu0 %v9885_v0  ;;  %v8075_v27 = vpop.permute.xlu0 %8074 }
0x127e   : > { %v7736_v47 = vand.u32 4294901760, %v7735_v35 }
0x1280   : > { %v7737_v17 = vsub.f32 %v7735_v35, %v7736_v47 }
0x1281   : > { %v8079_v28 = vpop.permute.xlu0 %8078 }
0x1282   : > { %v7738_v37 = vand.u32 4294901760, %v7737_v17 }
0x1283   : > { %v9729_v26 = vpop.eup %9728 }
0x1284   : > { %9507 = vmatpush3.msra.mxu1 %v7738_v37  ;;  %v7620_v38 = vmul.f32 %v9729_v26, %v9727_v31  ;;  %v8101_v31 = vsel %vm739_vm2, %v10231_v9, %v8075_v27 }
0x1285   : > { %9516 = vmatprep.subr.mxu1 %v9885_v0  ;;  %v8087_v29 = vpop.permute.xlu0 %8086  ;;  %v8102_v32 = vsel %vm1190_vm3, %v8101_v31, %v8079_v28 }
0x1286   : > { %v7625_v48 = vsel %vm1190_vm3, %v7620_v38, 0 }
0x1287   : > { %v7693_v60 = vand.u32 4294901760, %v7625_v48 }
0x1289   : > { %v7694_v39 = vsub.f32 %v7625_v48, %v7693_v60  ;;  %9509 = vmatmul.mubr.f32.vlgmr.msra.gmra.mxu1 %v7693_v60  ;;  %v8091_v30 = vpop.permute.xlu0 %8090 }
0x128a   : > { %9517 = vmatpush3.msra.mxu1 %v7658_v34  ;;  %9518 = vmatprep.mubr.msk.f32.mxu1 %vm9886_vm0, %v9885_v0 }
0x128b   : > { %9526 = vmatprep.subr.mxu1 %v9885_v0  ;;  %v7695_v40 = vand.u32 4294901760, %v7694_v39 }
0x128d   : > { %9519 = vmatmul.mubr.f32.vlgmr.msra.gmra.mxu1 %v7695_v40  ;;  %v7696_v41 = vsub.f32 %v7694_v39, %v7695_v40  ;;  %v8095_v33 = vpop.permute.xlu0 %8094 }
0x128e   : > { %9527 = vmatpush3.msra.mxu1 %v7658_v34  ;;  %9528 = vmatprep.mubr.msk.f32.mxu1 %vm9886_vm0, %v9885_v0  ;;  %v8104_v34 = vsel %vm8103_vm4, %v8102_v32, %v8083_v36 }
0x128f   : > { %v7697_v42 = vand.u32 4294901760, %v7696_v41  ;;  %9542 = vmatprep.subr.mxu1 %v9885_v0 }
0x1291   : > { %9504 = vmatmul.mubr.f32.vlgmr.msra.gmra.mxu0 %v7697_v42  ;;  %9529 = vmatmul.mubr.f32.vlgmr.msra.gmra.mxu1 %v7693_v60 }
0x1292   : > { %9512 = vmatpush3.msra.mxu0 %v7735_v35  ;;  %9513 = vmatprep.mubr.msk.f32.mxu0 %vm9886_vm0, %v9885_v0  ;;  %v8106_v35 = vsel %vm8105_vm5, %v8104_v34, %v8087_v29 }
0x1293   : > { %9521 = vmatprep.subr.mxu0 %v9885_v0  ;;  %9550 = vmatprep.mubr.msk.f32.mxu1 %vm9886_vm0, %v9885_v0 }
0x1294   : > { %9543 = vmatpush3.msra.mxu1 %v8235_v55 }
0x1295   : > { %9514 = vmatmul.mubr.f32.vlgmr.msra.gmra.mxu0 %v7694_v39  ;;  %9544 = vmatprep.subr.mxu1 %v9885_v0 }
0x1296   : > { %9522 = vmatpush3.msra.mxu0 %v7736_v47  ;;  %9523 = vmatprep.mubr.msk.f32.mxu0 %vm9886_vm0, %v9885_v0  ;;  %v8108_v47 = vsel %vm8107_vm6, %v8106_v35, %v8091_v30 }
0x1297   : > { %9531 = vmatprep.subr.mxu0 %v9885_v0  ;;  %9545 = vmatpush3.msra.mxu1 %v8242_v56  ;;  %v8110_v17 = vsel %vm8109_vm7, %v8108_v47, %v8095_v33 }
0x1298   : > { %9546 = vmatprep.subr.mxu1 %v9885_v0 }
0x1299   : > { %9524 = vmatmul.mubr.f32.vlgmr.msra.gmra.mxu0 %v7693_v60  ;;  %9547 = vmatpush3.msra.mxu1 %v8249_v8 }
0x129a   : > { %9539 = vmatprep.mubr.msk.f32.mxu0 %vm9886_vm0, %v9885_v0  ;;  %9532 = vmatpush3.msra.mxu0 %v10534_v45 }
0x129b   : > { %9533 = vmatprep.subr.mxu0 %v9885_v0  ;;  %9548 = vmatprep.subr.mxu1 %v9885_v0 }
0x129c   : > { %9534 = vmatpush3.msra.mxu0 %v10536_v46  ;;  %9549 = vmatpush3.msra.mxu1 %v8256_v13 }
0x129d   : > { %9535 = vmatprep.subr.mxu0 %v9885_v0  ;;  %9564 = vmatprep.subr.mxu1 %v9885_v0 }
0x129e   : > { %9536 = vmatpush3.msra.mxu0 %v10558_v58 }
0x129f   : > { %9537 = vmatprep.subr.mxu0 %v9885_v0 }
0x12a0   : > { %9538 = vmatpush3.msra.mxu0 %v10563_v63 }
0x12a1   : > { %9553 = vmatprep.subr.mxu0 %v9885_v0 }
0x1349   : > { %v7775_v59 = vpop.f32.mrf.mxu1 }
0x134b   : > { %v9510_v1 = vpop.f32.mrf.mxu1 }
0x134d   : > { %v7923_v4 = vpop.f32.mrf.mxu1 }
0x134f   : > { %v9520_v7 = vpop.f32.mrf.mxu1 }
0x1351   : > { %v7699_v11 = vpop.f32.mrf.mxu0  ;;  %v8069_v12 = vpop.f32.mrf.mxu1 }
0x1352   : > { %v7776_v16 = vadd.f32 %v7775_v59, %v7699_v11 }
0x1353   : > { %v9505_v14 = vpop.f32.mrf.mxu0  ;;  %v9530_v15 = vpop.f32.mrf.mxu1 }
0x1355   : > { %v7849_v18 = vpop.f32.mrf.mxu0 }
0x1356   : > { %v7850_v19 = vadd.f32 %v7849_v18, %v7776_v16 }
0x1357   : > { %v9515_v20 = vpop.f32.mrf.mxu0 }
0x1358   : > { %v7924_v21 = vadd.f32 %v7923_v4, %v7850_v19 }
0x1359   : > { %v7997_v22 = vpop.f32.mrf.mxu0 }
0x135a   : > { %v7998_v23 = vadd.f32 %v7997_v22, %v7924_v21 }
0x135b   : > { %v9525_v24 = vpop.f32.mrf.mxu0 }
0x135c   : > { %v8070_v25 = vadd.f32 %v8069_v12, %v7998_v23 }
0x135e   : > { %8098 = vrot.lane.b32.xlu0 %v8070_v25, %s9916_s10 }
0x13d0   : > { %v8099_v37 = vpop.permute.xlu0 %8098 }
0x13d1   : > { %v8112_v26 = vsel %vm8111_vm8, %v8110_v17, %v8099_v37 }
0x13d2   : > { %v8125_v38 = vsel %vm247_vm1, %v8112_v26, 0 }
0x13d3   : > { %v8196_v48 = vand.u32 4294901760, %v8125_v38 }
0x13d5   : > { %v8197_v60 = vsub.f32 %v8125_v38, %v8196_v48  ;;  %9551 = vmatmul.mubr.f32.vlgmr.msra.gmra.mxu1 %v8196_v48 }
0x13d6   : > { %9565 = vmatpush3.msra.mxu1 %v10534_v45  ;;  %9572 = vmatprep.mubr.msk.f32.mxu1 %vm9886_vm0, %v9885_v0 }
0x13d7   : > { %9566 = vmatprep.subr.mxu1 %v9885_v0  ;;  %v8198_v9 = vand.u32 4294901760, %v8197_v60 }
0x13d8   : > { %9567 = vmatpush3.msra.mxu1 %v10536_v46 }
0x13d9   : > { %9568 = vmatprep.subr.mxu1 %v9885_v0  ;;  %v8199_v39 = vsub.f32 %v8197_v60, %v8198_v9 }
0x13da   : > { %9569 = vmatpush3.msra.mxu1 %v10558_v58 }
0x13db   : > { %9570 = vmatprep.subr.mxu1 %v9885_v0  ;;  %v8200_v40 = vand.u32 4294901760, %v8199_v39 }
0x13dc   : > { %9571 = vmatpush3.msra.mxu1 %v10563_v63 }
0x13dd   : > { %9573 = vmatmul.mubr.f32.vlgmr.msra.gmra.mxu1 %v8198_v9  ;;  %9586 = vmatprep.subr.mxu1 %v9885_v0 }
0x13de   : > { %9540 = vmatmul.mubr.f32.vlgmr.msra.gmra.mxu0 %v8200_v40  ;;  %9587 = vmatpush3.msra.mxu1 %v10534_v45 }
0x13df   : > { %9554 = vmatpush3.msra.mxu0 %v10539_v49  ;;  %9588 = vmatprep.subr.mxu1 %v9885_v0  ;;  %v8728_v49 = vld [vmem:[%s10672_s3] ss:$0 sm:$0xff] }
0x13e0   : > { %9555 = vmatprep.subr.mxu0 %v9885_v0  ;;  %9589 = vmatpush3.msra.mxu1 %v10536_v46 }
0x13e1   : > { %9556 = vmatpush3.msra.mxu0 %v10542_v50  ;;  %9590 = vmatprep.subr.mxu1 %v9885_v0 }
0x13e2   : > { %9557 = vmatprep.subr.mxu0 %v9885_v0  ;;  %9591 = vmatpush3.msra.mxu1 %v10558_v58 }
0x13e3   : > { %9558 = vmatpush3.msra.mxu0 %v10561_v62  ;;  %9592 = vmatprep.subr.mxu1 %v9885_v0 }
0x13e4   : > { %9559 = vmatprep.subr.mxu0 %v9885_v0  ;;  %9561 = vmatprep.mubr.msk.f32.mxu0 %vm9886_vm0, %v9885_v0 }
0x13e5   : > { %9560 = vmatpush3.msra.mxu0 %v10569_v3  ;;  %9593 = vmatpush3.msra.mxu1 %v10563_v63 }
0x13e6   : > { %9594 = vmatprep.mubr.msk.f32.mxu1 %vm9886_vm0, %v9885_v0  ;;  %9562 = vmatmul.mubr.f32.vlgmr.msra.gmra.mxu0 %v8197_v60 }
0x13e7   : > { %9575 = vmatprep.subr.mxu0 %v9885_v0  ;;  %9595 = vmatmul.mubr.f32.vlgmr.msra.gmra.mxu1 %v8196_v48 }
0x13e8   : > { %9576 = vmatpush3.msra.mxu0 %v8233_v51  ;;  %9583 = vmatprep.mubr.msk.f32.mxu0 %vm9886_vm0, %v9885_v0 }
0x13e9   : > { %9577 = vmatprep.subr.mxu0 %v9885_v0 }
0x13ea   : > { %9578 = vmatpush3.msra.mxu0 %v8240_v52 }
0x13eb   : > { %9579 = vmatprep.subr.mxu0 %v9885_v0 }
0x13ec   : > { %9580 = vmatpush3.msra.mxu0 %v8247_v2 }
0x13ed   : > { %9581 = vmatprep.subr.mxu0 %v9885_v0 }
0x13ee   : > { %9582 = vmatpush3.msra.mxu0 %v8254_v6 }
0x13ef   : > { %9584 = vmatmul.mubr.f32.vlgmr.msra.gmra.mxu0 %v8196_v48 }
0x1495   : > { %v8293_v41 = vpop.f32.mrf.mxu1 }
0x1497   : > { %v9552_v42 = vpop.f32.mrf.mxu1 }
0x149d   : > { %v8450_v43 = vpop.f32.mrf.mxu1 }
0x149e   : > { %v8202_v44 = vpop.f32.mrf.mxu0 }
0x149f   : > { %v9574_v45 = vpop.f32.mrf.mxu1  ;;  %v8203_v50 = vadd.f32 %v8728_v49, %v8202_v44 }
0x14a0   : > { %v9541_v46 = vpop.f32.mrf.mxu0 }
0x14a1   : > { %v8294_v0 = vadd.f32 %v8293_v41, %v8203_v50 }
0x14a6   : > { %v8373_v51 = vpop.f32.mrf.mxu0 }
0x14a7   : > { %v8608_v52 = vpop.f32.mrf.mxu1  ;;  %v8374_v55 = vadd.f32 %v8373_v51, %v8294_v0 }
0x14a8   : > { %v9563_v53 = vpop.f32.mrf.mxu0 }
0x14a9   : > { %v9596_v54 = vpop.f32.mrf.mxu1  ;;  %v8451_v56 = vadd.f32 %v8450_v43, %v8374_v55 }
0x14af   : > { %v8533_v57 = vpop.f32.mrf.mxu0 }
0x14b0   : > { %v8534_v58 = vadd.f32 %v8533_v57, %v8451_v56 }
0x14b1   : > { %v9585_v59 = vpop.f32.mrf.mxu0 }
0x14b2   : > { %v8609_v61 = vadd.f32 %v8608_v52, %v8534_v58 }
0x14b4   : > { %8612 = vst.msk [vmem:[%s241_s5] sm:$0xff] %vm247_vm1, %v8609_v61 }
0x14b5   : > { %9823 = shalt.err (!%p9820_p9)
}
0x14b6   : > { %s9824_s27 = scalar_lea.hbm %s8625_s13, 128  ;;  %s9828_s9 = scalar_lea.hbm %s10673_s4, 256 }
0x14b7   : > { %p9825_p13 = scmp.ne.s32.totalorder %s8625_s13, %s9824_s27  ;;  %p9829_p4 = scmp.lt.s32.totalorder %s8625_s13, %s10673_s4 }
0x14b8   : > { %p9830_p8 = scmp.lt.s32.totalorder %s9828_s9, %s9824_s27 }
0x14b9   : > { %p9826_p5 = pnand %p9825_p13, %p10689_p0 }
0x14ba   : > { %p9831_p3 = por %p9830_p8, %p9829_p4 }
0x14bb   : > { %p9827_p10 = pneg %p9826_p5 }
0x14bd   : > { %p9832_p11 = pnand %p9831_p3, %p9827_p10 }
0x14bf   : > { %9835 = shalt.err (!%p9832_p11)
}
0x14c0   : > { %9607 = dma.vmem_to_hbm [thread:$0]  (%p10689_p0), %s8628_s6, 128, %s8625_s13, %s8614_s25  }
0x14c1 PF: > { %s8639_s23 = sand.u32 1, %s9866_s15   ;;  %p10690_p1 = scmp.ne.s32.totalorder %s10679_s22, 0 }
0x14c2   : > { %p10691_p2 = scmp.ge.s32.totalorder %s9878_s18, 2  ;;  %s8640_s29 = scalar_lea.sflag [#allocation4], %s8639_s23 }
0x14c4   : > { %p9621_p6 = pnand %p10691_p2, %p10690_p1 }
0x14c6   : > { %p9622_p12 = pneg %p9621_p6 }
0x14c8   : > { %9861 = dma.done.wait (%p9622_p12), %s8640_s29, 128  }
0x14c9   : > { %9863 = vsyncadd (%p9622_p12), %s8640_s29, 4294967168  ;;  %p18_p7 = scmp.ge.s32.totalorder %s10015_s11, 4   ;;  %s10692_s15 = smov %s9870_s16 }
0x14ca   : > { %s10693_s16 = smov %s9874_s17  ;;  %s10694_s17 = smov %s10031_s20 }
0x14cb   : > { %s10695_s18 = smov %s10015_s11  ;;  %20 = sbr.rel (!%p18_p7) target bundleno = 6 (0x6), region = 89 }
0x14d0   :  { %8645 = vsyncpa [#allocation3], 1 }
0x14d1   :  { %8647 = vsyncpa [#allocation3 + $0x1], 1 }
0x14d2   :  { %8648 = vsyncpa [#allocation6], 1 }
0x14d3   :  { %8649 = vsyncpa [#allocation4], 1 }
0x14d4   :  { %8651 = vsyncpa [#allocation4 + $0x1], 1 }

</bundles_post_ra>
